<compile_context>
chip_gen: v7x
topology: tpu7x:2x2x1
jax: 0.10.0
libtpu: 0.0.40
codegen_flags: <defaults>
</compile_context>

<pallas_src>
from functools import partial

import jax
import jax.numpy as jnp
from jax import lax
from jax.experimental import pallas as pl
from jax.experimental.pallas import tpu as pltpu

BN_EPS = 1e-5


# ----------------------------------------------------------------------------- kernel
def _ghostconv_kernel(x_ref, w1_ref, b1_ref, f1w_ref, f1b_ref,
                      w2_ref, b2_ref, f2w_ref, f2b_ref, out_ref, *, H, W):
    """One image. Layout: channels on sublanes, flattened spatial H*W on lanes.
    x_ref: (1, c1, H*W) -> out_ref: (1, 2*c_, H*W)."""
    f32 = jnp.float32
    HW = H * W
    c1 = x_ref.shape[1]
    c_ = w1_ref.shape[0]

    x = x_ref[0, :, :].astype(f32)                      # (c1, HW), lane-dense

    # Column-validity masks shared by every depthwise conv (max pad = 2).
    col = lax.broadcasted_iota(jnp.int32, (1, HW), 1) % W
    col_ok = {ow: (col < W - ow) if ow > 0 else (col >= -ow)
              for ow in (-2, -1, 1, 2)}

    def shift(v, s):
        # out[:, i] = v[:, i + s] if 0 <= i + s < HW else 0.  Pure in-register lane
        # shift (no VMEM scratch round trip); row out-of-range positions are either
        # zero-filled here or killed by the column mask below.
        if s == 0:
            return v
        rows = v.shape[0]
        if s > 0:
            return jnp.concatenate([v[:, s:], jnp.zeros((rows, s), f32)], axis=1)
        return jnp.concatenate([jnp.zeros((rows, -s), f32), v[:, :HW + s]], axis=1)

    def dwconv(v, w_tbl, k, pad):
        # Depthwise k x k conv (stride 1, padding `pad`) on the flat layout,
        # vectorized over ALL channels: one multiply-add per tap.
        acc = jnp.zeros_like(v)
        for dh in range(k):
            for dw in range(k):
                oh, ow = dh - pad, dw - pad
                t = shift(v, oh * W + ow)
                if ow != 0:
                    t = jnp.where(col_ok[ow], t, 0.0)
                acc = acc + w_tbl[:, dh * k + dw: dh * k + dw + 1] * t
        return acc

    # --- cv1: 1x1 pointwise conv + folded BN ----------------------------------------
    if c1 >= 8:
        # Production widths: pointwise conv is exactly a matmul -> MXU, f32 accumulate.
        y = jnp.dot(w1_ref[...], x, preferred_element_type=f32)
    else:
        # Toy widths: outer-product accumulation on the VPU (MXU would be wasted).
        w1 = w1_ref[...]
        y = jnp.zeros((c_, HW), f32)
        for ci in range(c1):
            y = y + w1[:, ci:ci + 1] * x[ci:ci + 1, :]
    y = y + b1_ref[...]

    # --- FReLU after cv1: max(y, BN(DWConv3x3(y))) ------------------------------------
    y = jnp.maximum(y, dwconv(y, f1w_ref[...], 3, 1) + f1b_ref[...])

    # --- cv2: depthwise 5x5 "ghost" conv + folded BN -----------------------------------
    z = dwconv(y, w2_ref[...], 5, 2) + b2_ref[...]

    # --- FReLU after cv2 ----------------------------------------------------------------
    z = jnp.maximum(z, dwconv(z, f2w_ref[...], 3, 1) + f2b_ref[...])

    # --- concat([y, cv2(y)], dim=1): one dense, lane-wide (c2, HW) store ---------------
    out_ref[0, :, :] = jnp.concatenate([y, z], axis=0).astype(out_ref.dtype)


# ----------------------------------------------------------------------------- wrapper
def ghost_conv(x, fp):
    """Pallas GhostConv forward. x: (N, c1, H, W); fp: folded params (fold_ghostconv_params)."""
    N, c1, H, W = x.shape
    c_ = fp["w1"].shape[0]
    c2 = 2 * c_
    HW = H * W

    # Layout plumbing only: contiguous reshape so H*W lands on the lane axis.
    x_flat = x.reshape(N, c1, HW)

    def full(a):  # whole small table as one VMEM block (constant index_map)
        return pl.BlockSpec(a.shape, lambda n: (0,) * a.ndim)

    out_flat = pl.pallas_call(
        partial(_ghostconv_kernel, H=H, W=W),
        out_shape=jax.ShapeDtypeStruct((N, c2, HW), x.dtype),
        grid_spec=pltpu.PrefetchScalarGridSpec(
            num_scalar_prefetch=0,
            grid=(N,),
            in_specs=[
                pl.BlockSpec((1, c1, HW), lambda n: (n, 0, 0)),
                full(fp["w1"]), full(fp["b1"]),
                full(fp["f1w"]), full(fp["f1b"]),
                full(fp["w2"]), full(fp["b2"]),
                full(fp["f2w"]), full(fp["f2b"]),
            ],
            out_specs=pl.BlockSpec((1, c2, HW), lambda n: (n, 0, 0)),
        ),
        compiler_params=pltpu.CompilerParams(
            dimension_semantics=("parallel",),
            vmem_limit_bytes=32 * 1024 * 1024,
        ),
    )(x_flat, fp["w1"], fp["b1"], fp["f1w"], fp["f1b"],
      fp["w2"], fp["b2"], fp["f2w"], fp["f2b"])

    return out_flat.reshape(N, c2, H, W)


# ----------------------------------------------------------------------------- params
def _rand_bn(key, c):
    k1, k2, k3, k4 = jax.random.split(key, 4)
    return dict(
        gamma=1.0 + 0.1 * jax.random.normal(k1, (c,), jnp.float32),
        beta=0.1 * jax.random.normal(k2, (c,), jnp.float32),
        mean=0.1 * jax.random.normal(k3, (c,), jnp.float32),
        var=1.0 + 0.1 * jax.random.uniform(k4, (c,), dtype=jnp.float32),
    )


def init_ghostconv_params(key, c1, c2):
    assert c2 % 2 == 0
    c_ = c2 // 2
    ks = jax.random.split(key, 8)
    return dict(
        cv1_w=0.5 * jax.random.normal(ks[0], (c_, c1, 1, 1), jnp.float32),
        bn1=_rand_bn(ks[1], c_),
        f1_w=0.5 * jax.random.normal(ks[2], (c_, 1, 3, 3), jnp.float32),
        f1_bn=_rand_bn(ks[3], c_),
        cv2_w=0.5 * jax.random.normal(ks[4], (c_, 1, 5, 5), jnp.float32),
        bn2=_rand_bn(ks[5], c_),
        f2_w=0.5 * jax.random.normal(ks[6], (c_, 1, 3, 3), jnp.float32),
        f2_bn=_rand_bn(ks[7], c_),
    )


def _fold_bn(bn):
    s = bn["gamma"] / jnp.sqrt(bn["var"] + BN_EPS)
    return s, bn["beta"] - bn["mean"] * s


def fold_ghostconv_params(p):
    c_, c1 = p["cv1_w"].shape[:2]
    s1, b1 = _fold_bn(p["bn1"])
    sf1, bf1 = _fold_bn(p["f1_bn"])
    s2, b2 = _fold_bn(p["bn2"])
    sf2, bf2 = _fold_bn(p["f2_bn"])
    f32 = jnp.float32
    return dict(
        w1=(p["cv1_w"][:, :, 0, 0] * s1[:, None]).astype(f32),            # (c_, c1)
        b1=b1[:, None].astype(f32),                                       # (c_, 1)
        f1w=(p["f1_w"][:, 0].reshape(c_, 9) * sf1[:, None]).astype(f32),  # (c_, 9)
        f1b=bf1[:, None].astype(f32),
        w2=(p["cv2_w"][:, 0].reshape(c_, 25) * s2[:, None]).astype(f32),  # (c_, 25)
        b2=b2[:, None].astype(f32),
        f2w=(p["f2_w"][:, 0].reshape(c_, 9) * sf2[:, None]).astype(f32),
        f2b=bf2[:, None].astype(f32),
    )


# ----------------------------------------------------------------------------- plain-JAX reference
def _conv2d_ref(x, w, pad, groups):
    return jax.lax.conv_general_dilated(
        x, w, window_strides=(1, 1), padding=[(pad, pad), (pad, pad)],
        dimension_numbers=("NCHW", "OIHW", "NCHW"),
        feature_group_count=groups, precision=jax.lax.Precision.HIGHEST)


def _bn_ref(x, bn):
    s, b = _fold_bn(bn)
    return x * s[None, :, None, None] + b[None, :, None, None]


def _frelu_ref(x, w, bn):
    return jnp.maximum(x, _bn_ref(_conv2d_ref(x, w, 1, x.shape[1]), bn))


def ghost_conv_ref(x, p):
    c_ = p["cv1_w"].shape[0]
    y = _bn_ref(_conv2d_ref(x, p["cv1_w"], 0, 1), p["bn1"])
    y = _frelu_ref(y, p["f1_w"], p["f1_bn"])
    z = _bn_ref(_conv2d_ref(y, p["cv2_w"], 2, c_), p["bn2"])
    z = _frelu_ref(z, p["f2_w"], p["f2_bn"])
    return jnp.concatenate([y, z], axis=1)


# ----------------------------------------------------------------------------- main
if __name__ == "__main__":
    key = jax.random.PRNGKey(0)
    kx, kp = jax.random.split(key)

    N, c1, c2, H, W = 2, 4, 8, 16, 16
    x = jax.random.normal(kx, (N, c1, H, W), dtype=jnp.float32)

    raw = init_ghostconv_params(kp, c1, c2)
    folded = fold_ghostconv_params(raw)

    out = ghost_conv(x, folded)
    out = jax.block_until_ready(out)

    ref = ghost_conv_ref(x, raw)
    assert out.shape == (N, c2, H, W), out.shape
    max_err = float(jnp.max(jnp.abs(out - ref)))
    assert jnp.allclose(out, ref, atol=1e-4, rtol=1e-4), max_err

    print("KERNEL_OK")
</pallas_src>

<mosaic_0001>
module attributes {stable_mosaic.version = 11 : i64} {
  func.func @_ghostconv_kernel(%arg0: i32, %arg1: memref<1x4x256xf32, #tpu.memory_space<vmem>>, %arg2: memref<4x4xf32, #tpu.memory_space<vmem>>, %arg3: memref<4x1xf32, #tpu.memory_space<vmem>>, %arg4: memref<4x9xf32, #tpu.memory_space<vmem>>, %arg5: memref<4x1xf32, #tpu.memory_space<vmem>>, %arg6: memref<4x25xf32, #tpu.memory_space<vmem>>, %arg7: memref<4x1xf32, #tpu.memory_space<vmem>>, %arg8: memref<4x9xf32, #tpu.memory_space<vmem>>, %arg9: memref<4x1xf32, #tpu.memory_space<vmem>>, %arg10: memref<1x8x256xf32, #tpu.memory_space<vmem>>) attributes {dimension_semantics = [#tpu.dimension_semantics<parallel>], iteration_bounds = array<i64: 2>, scalar_prefetch = 0 : i64, scratch_operands = 0 : i64, tpu.core_type = #tpu.core_type<tc>, window_params = [{transform_indices = @transform_0, window_bounds = array<i64: 1, 4, 256>}, {pipeline_mode = #tpu.pipeline_mode<synchronous>, transform_indices = @transform_1, window_bounds = array<i64: 4, 4>}, {pipeline_mode = #tpu.pipeline_mode<synchronous>, transform_indices = @transform_2, window_bounds = array<i64: 4, 1>}, {pipeline_mode = #tpu.pipeline_mode<synchronous>, transform_indices = @transform_3, window_bounds = array<i64: 4, 9>}, {pipeline_mode = #tpu.pipeline_mode<synchronous>, transform_indices = @transform_4, window_bounds = array<i64: 4, 1>}, {pipeline_mode = #tpu.pipeline_mode<synchronous>, transform_indices = @transform_5, window_bounds = array<i64: 4, 25>}, {pipeline_mode = #tpu.pipeline_mode<synchronous>, transform_indices = @transform_6, window_bounds = array<i64: 4, 1>}, {pipeline_mode = #tpu.pipeline_mode<synchronous>, transform_indices = @transform_7, window_bounds = array<i64: 4, 9>}, {pipeline_mode = #tpu.pipeline_mode<synchronous>, transform_indices = @transform_8, window_bounds = array<i64: 4, 1>}, {transform_indices = @transform_9, window_bounds = array<i64: 1, 8, 256>}]} {
    %c0 = arith.constant 0 : index
    %c0_0 = arith.constant 0 : index
    %c0_1 = arith.constant 0 : index
    %0 = vector.load %arg1[%c0, %c0_0, %c0_1] : memref<1x4x256xf32, #tpu.memory_space<vmem>>, vector<1x4x256xf32>
    %1 = vector.shape_cast %0 : vector<1x4x256xf32> to vector<4x256xf32>
    %2 = tpu.iota {dimensions = array<i32: 1>} : vector<1x256xi32>
    %c16_i32 = arith.constant 16 : i32
    %c0_i32 = arith.constant 0 : i32
    %3 = arith.cmpi eq, %c16_i32, %c0_i32 : i32
    %c1_i32 = arith.constant 1 : i32
    %4 = arith.select %3, %c1_i32, %c16_i32 : i32
    %5 = vector.broadcast %4 : i32 to vector<1x256xi32>
    %6 = arith.remsi %2, %5 : vector<1x256xi32>
    %c0_i32_2 = arith.constant 0 : i32
    %7 = vector.broadcast %c0_i32_2 : i32 to vector<1x256xi32>
    %8 = arith.cmpi ne, %6, %7 : vector<1x256xi32>
    %c0_i32_3 = arith.constant 0 : i32
    %9 = vector.broadcast %c0_i32_3 : i32 to vector<1x256xi32>
    %10 = arith.cmpi slt, %6, %9 : vector<1x256xi32>
    %c0_i32_4 = arith.constant 0 : i32
    %11 = arith.cmpi slt, %4, %c0_i32_4 : i32
    %12 = vector.broadcast %11 : i1 to vector<1x256xi1>
    %13 = vector.broadcast %12 : vector<1x256xi1> to vector<1x256xi1>
    %14 = arith.xori %10, %13 : vector<1x256xi1>
    %15 = arith.andi %14, %8 : vector<1x256xi1>
    %16 = vector.broadcast %4 : i32 to vector<1x256xi32>
    %17 = arith.addi %6, %16 : vector<1x256xi32>
    %18 = arith.select %15, %17, %6 : vector<1x256xi1>, vector<1x256xi32>
    %c2_i32 = arith.constant 2 : i32
    %19 = vector.broadcast %c2_i32 : i32 to vector<1x256xi32>
    %20 = arith.cmpi sge, %18, %19 : vector<1x256xi32>
    %c1_i32_5 = arith.constant 1 : i32
    %21 = vector.broadcast %c1_i32_5 : i32 to vector<1x256xi32>
    %22 = arith.cmpi sge, %18, %21 : vector<1x256xi32>
    %c15_i32 = arith.constant 15 : i32
    %23 = vector.broadcast %c15_i32 : i32 to vector<1x256xi32>
    %24 = arith.cmpi slt, %18, %23 : vector<1x256xi32>
    %c14_i32 = arith.constant 14 : i32
    %25 = vector.broadcast %c14_i32 : i32 to vector<1x256xi32>
    %26 = arith.cmpi slt, %18, %25 : vector<1x256xi32>
    %c0_6 = arith.constant 0 : index
    %c0_7 = arith.constant 0 : index
    %27 = vector.load %arg2[%c0_6, %c0_7] : memref<4x4xf32, #tpu.memory_space<vmem>>, vector<4x4xf32>
    %cst = arith.constant 0.000000e+00 : f32
    %28 = vector.broadcast %cst : f32 to vector<4x256xf32>
    %29 = vector.extract_strided_slice %27 {offsets = [0, 0], sizes = [4, 1], strides = [1, 1]} : vector<4x4xf32> to vector<4x1xf32>
    %30 = vector.extract_strided_slice %1 {offsets = [0, 0], sizes = [1, 256], strides = [1, 1]} : vector<4x256xf32> to vector<1x256xf32>
    %31 = vector.broadcast %29 : vector<4x1xf32> to vector<4x256xf32>
    %32 = vector.broadcast %30 : vector<1x256xf32> to vector<4x256xf32>
    %33 = arith.mulf %31, %32 : vector<4x256xf32>
    %34 = arith.addf %28, %33 : vector<4x256xf32>
    %35 = vector.extract_strided_slice %27 {offsets = [0, 1], sizes = [4, 1], strides = [1, 1]} : vector<4x4xf32> to vector<4x1xf32>
    %36 = vector.extract_strided_slice %1 {offsets = [1, 0], sizes = [1, 256], strides = [1, 1]} : vector<4x256xf32> to vector<1x256xf32>
    %37 = vector.broadcast %35 : vector<4x1xf32> to vector<4x256xf32>
    %38 = vector.broadcast %36 : vector<1x256xf32> to vector<4x256xf32>
    %39 = arith.mulf %37, %38 : vector<4x256xf32>
    %40 = arith.addf %34, %39 : vector<4x256xf32>
    %41 = vector.extract_strided_slice %27 {offsets = [0, 2], sizes = [4, 1], strides = [1, 1]} : vector<4x4xf32> to vector<4x1xf32>
    %42 = vector.extract_strided_slice %1 {offsets = [2, 0], sizes = [1, 256], strides = [1, 1]} : vector<4x256xf32> to vector<1x256xf32>
    %43 = vector.broadcast %41 : vector<4x1xf32> to vector<4x256xf32>
    %44 = vector.broadcast %42 : vector<1x256xf32> to vector<4x256xf32>
    %45 = arith.mulf %43, %44 : vector<4x256xf32>
    %46 = arith.addf %40, %45 : vector<4x256xf32>
    %47 = vector.extract_strided_slice %27 {offsets = [0, 3], sizes = [4, 1], strides = [1, 1]} : vector<4x4xf32> to vector<4x1xf32>
    %48 = vector.extract_strided_slice %1 {offsets = [3, 0], sizes = [1, 256], strides = [1, 1]} : vector<4x256xf32> to vector<1x256xf32>
    %49 = vector.broadcast %47 : vector<4x1xf32> to vector<4x256xf32>
    %50 = vector.broadcast %48 : vector<1x256xf32> to vector<4x256xf32>
    %51 = arith.mulf %49, %50 : vector<4x256xf32>
    %52 = arith.addf %46, %51 : vector<4x256xf32>
    %c0_8 = arith.constant 0 : index
    %c0_9 = arith.constant 0 : index
    %53 = vector.load %arg3[%c0_8, %c0_9] : memref<4x1xf32, #tpu.memory_space<vmem>>, vector<4x1xf32>
    %54 = vector.broadcast %53 : vector<4x1xf32> to vector<4x256xf32>
    %55 = arith.addf %52, %54 : vector<4x256xf32>
    %c0_10 = arith.constant 0 : index
    %c0_11 = arith.constant 0 : index
    %56 = vector.load %arg4[%c0_10, %c0_11] : memref<4x9xf32, #tpu.memory_space<vmem>>, vector<4x9xf32>
    %cst_12 = arith.constant 0.000000e+00 : f32
    %57 = vector.broadcast %cst_12 : f32 to vector<4x256xf32>
    %cst_13 = arith.constant 0.000000e+00 : f32
    %58 = vector.broadcast %cst_13 : f32 to vector<4x17xf32>
    %59 = vector.extract_strided_slice %55 {offsets = [0, 0], sizes = [4, 239], strides = [1, 1]} : vector<4x256xf32> to vector<4x239xf32>
    %60 = tpu.concatenate %58, %59 in 1 : vector<4x17xf32>, vector<4x239xf32> -> vector<4x256xf32>
    %cst_14 = arith.constant 0.000000e+00 : f32
    %61 = vector.shape_cast %22 : vector<1x256xi1> to vector<1x256xi1>
    %62 = vector.broadcast %61 : vector<1x256xi1> to vector<4x256xi1>
    %63 = vector.broadcast %cst_14 : f32 to vector<4x256xf32>
    %64 = arith.select %62, %60, %63 : vector<4x256xi1>, vector<4x256xf32>
    %65 = vector.extract_strided_slice %56 {offsets = [0, 0], sizes = [4, 1], strides = [1, 1]} : vector<4x9xf32> to vector<4x1xf32>
    %66 = vector.broadcast %65 : vector<4x1xf32> to vector<4x256xf32>
    %67 = arith.mulf %66, %64 : vector<4x256xf32>
    %68 = arith.addf %57, %67 : vector<4x256xf32>
    %cst_15 = arith.constant 0.000000e+00 : f32
    %69 = vector.broadcast %cst_15 : f32 to vector<4x16xf32>
    %70 = vector.extract_strided_slice %55 {offsets = [0, 0], sizes = [4, 240], strides = [1, 1]} : vector<4x256xf32> to vector<4x240xf32>
    %71 = tpu.concatenate %69, %70 in 1 : vector<4x16xf32>, vector<4x240xf32> -> vector<4x256xf32>
    %72 = vector.extract_strided_slice %56 {offsets = [0, 1], sizes = [4, 1], strides = [1, 1]} : vector<4x9xf32> to vector<4x1xf32>
    %73 = vector.broadcast %72 : vector<4x1xf32> to vector<4x256xf32>
    %74 = arith.mulf %73, %71 : vector<4x256xf32>
    %75 = arith.addf %68, %74 : vector<4x256xf32>
    %cst_16 = arith.constant 0.000000e+00 : f32
    %76 = vector.broadcast %cst_16 : f32 to vector<4x15xf32>
    %77 = vector.extract_strided_slice %55 {offsets = [0, 0], sizes = [4, 241], strides = [1, 1]} : vector<4x256xf32> to vector<4x241xf32>
    %78 = tpu.concatenate %76, %77 in 1 : vector<4x15xf32>, vector<4x241xf32> -> vector<4x256xf32>
    %cst_17 = arith.constant 0.000000e+00 : f32
    %79 = vector.shape_cast %24 : vector<1x256xi1> to vector<1x256xi1>
    %80 = vector.broadcast %79 : vector<1x256xi1> to vector<4x256xi1>
    %81 = vector.broadcast %cst_17 : f32 to vector<4x256xf32>
    %82 = arith.select %80, %78, %81 : vector<4x256xi1>, vector<4x256xf32>
    %83 = vector.extract_strided_slice %56 {offsets = [0, 2], sizes = [4, 1], strides = [1, 1]} : vector<4x9xf32> to vector<4x1xf32>
    %84 = vector.broadcast %83 : vector<4x1xf32> to vector<4x256xf32>
    %85 = arith.mulf %84, %82 : vector<4x256xf32>
    %86 = arith.addf %75, %85 : vector<4x256xf32>
    %cst_18 = arith.constant 0.000000e+00 : f32
    %87 = vector.broadcast %cst_18 : f32 to vector<4x1xf32>
    %88 = vector.extract_strided_slice %55 {offsets = [0, 0], sizes = [4, 255], strides = [1, 1]} : vector<4x256xf32> to vector<4x255xf32>
    %89 = tpu.concatenate %87, %88 in 1 : vector<4x1xf32>, vector<4x255xf32> -> vector<4x256xf32>
    %cst_19 = arith.constant 0.000000e+00 : f32
    %90 = vector.shape_cast %22 : vector<1x256xi1> to vector<1x256xi1>
    %91 = vector.broadcast %90 : vector<1x256xi1> to vector<4x256xi1>
    %92 = vector.broadcast %cst_19 : f32 to vector<4x256xf32>
    %93 = arith.select %91, %89, %92 : vector<4x256xi1>, vector<4x256xf32>
    %94 = vector.extract_strided_slice %56 {offsets = [0, 3], sizes = [4, 1], strides = [1, 1]} : vector<4x9xf32> to vector<4x1xf32>
    %95 = vector.broadcast %94 : vector<4x1xf32> to vector<4x256xf32>
    %96 = arith.mulf %95, %93 : vector<4x256xf32>
    %97 = arith.addf %86, %96 : vector<4x256xf32>
    %98 = vector.extract_strided_slice %56 {offsets = [0, 4], sizes = [4, 1], strides = [1, 1]} : vector<4x9xf32> to vector<4x1xf32>
    %99 = vector.broadcast %98 : vector<4x1xf32> to vector<4x256xf32>
    %100 = arith.mulf %99, %55 : vector<4x256xf32>
    %101 = arith.addf %97, %100 : vector<4x256xf32>
    %102 = vector.extract_strided_slice %55 {offsets = [0, 1], sizes = [4, 255], strides = [1, 1]} : vector<4x256xf32> to vector<4x255xf32>
    %cst_20 = arith.constant 0.000000e+00 : f32
    %103 = vector.broadcast %cst_20 : f32 to vector<4x1xf32>
    %104 = tpu.concatenate %102, %103 in 1 : vector<4x255xf32>, vector<4x1xf32> -> vector<4x256xf32>
    %cst_21 = arith.constant 0.000000e+00 : f32
    %105 = vector.shape_cast %24 : vector<1x256xi1> to vector<1x256xi1>
    %106 = vector.broadcast %105 : vector<1x256xi1> to vector<4x256xi1>
    %107 = vector.broadcast %cst_21 : f32 to vector<4x256xf32>
    %108 = arith.select %106, %104, %107 : vector<4x256xi1>, vector<4x256xf32>
    %109 = vector.extract_strided_slice %56 {offsets = [0, 5], sizes = [4, 1], strides = [1, 1]} : vector<4x9xf32> to vector<4x1xf32>
    %110 = vector.broadcast %109 : vector<4x1xf32> to vector<4x256xf32>
    %111 = arith.mulf %110, %108 : vector<4x256xf32>
    %112 = arith.addf %101, %111 : vector<4x256xf32>
    %113 = vector.extract_strided_slice %55 {offsets = [0, 15], sizes = [4, 241], strides = [1, 1]} : vector<4x256xf32> to vector<4x241xf32>
    %cst_22 = arith.constant 0.000000e+00 : f32
    %114 = vector.broadcast %cst_22 : f32 to vector<4x15xf32>
    %115 = tpu.concatenate %113, %114 in 1 : vector<4x241xf32>, vector<4x15xf32> -> vector<4x256xf32>
    %cst_23 = arith.constant 0.000000e+00 : f32
    %116 = vector.shape_cast %22 : vector<1x256xi1> to vector<1x256xi1>
    %117 = vector.broadcast %116 : vector<1x256xi1> to vector<4x256xi1>
    %118 = vector.broadcast %cst_23 : f32 to vector<4x256xf32>
    %119 = arith.select %117, %115, %118 : vector<4x256xi1>, vector<4x256xf32>
    %120 = vector.extract_strided_slice %56 {offsets = [0, 6], sizes = [4, 1], strides = [1, 1]} : vector<4x9xf32> to vector<4x1xf32>
    %121 = vector.broadcast %120 : vector<4x1xf32> to vector<4x256xf32>
    %122 = arith.mulf %121, %119 : vector<4x256xf32>
    %123 = arith.addf %112, %122 : vector<4x256xf32>
    %124 = vector.extract_strided_slice %55 {offsets = [0, 16], sizes = [4, 240], strides = [1, 1]} : vector<4x256xf32> to vector<4x240xf32>
    %cst_24 = arith.constant 0.000000e+00 : f32
    %125 = vector.broadcast %cst_24 : f32 to vector<4x16xf32>
    %126 = tpu.concatenate %124, %125 in 1 : vector<4x240xf32>, vector<4x16xf32> -> vector<4x256xf32>
    %127 = vector.extract_strided_slice %56 {offsets = [0, 7], sizes = [4, 1], strides = [1, 1]} : vector<4x9xf32> to vector<4x1xf32>
    %128 = vector.broadcast %127 : vector<4x1xf32> to vector<4x256xf32>
    %129 = arith.mulf %128, %126 : vector<4x256xf32>
    %130 = arith.addf %123, %129 : vector<4x256xf32>
    %131 = vector.extract_strided_slice %55 {offsets = [0, 17], sizes = [4, 239], strides = [1, 1]} : vector<4x256xf32> to vector<4x239xf32>
    %cst_25 = arith.constant 0.000000e+00 : f32
    %132 = vector.broadcast %cst_25 : f32 to vector<4x17xf32>
    %133 = tpu.concatenate %131, %132 in 1 : vector<4x239xf32>, vector<4x17xf32> -> vector<4x256xf32>
    %cst_26 = arith.constant 0.000000e+00 : f32
    %134 = vector.shape_cast %24 : vector<1x256xi1> to vector<1x256xi1>
    %135 = vector.broadcast %134 : vector<1x256xi1> to vector<4x256xi1>
    %136 = vector.broadcast %cst_26 : f32 to vector<4x256xf32>
    %137 = arith.select %135, %133, %136 : vector<4x256xi1>, vector<4x256xf32>
    %138 = vector.extract_strided_slice %56 {offsets = [0, 8], sizes = [4, 1], strides = [1, 1]} : vector<4x9xf32> to vector<4x1xf32>
    %139 = vector.broadcast %138 : vector<4x1xf32> to vector<4x256xf32>
    %140 = arith.mulf %139, %137 : vector<4x256xf32>
    %141 = arith.addf %130, %140 : vector<4x256xf32>
    %c0_27 = arith.constant 0 : index
    %c0_28 = arith.constant 0 : index
    %142 = vector.load %arg5[%c0_27, %c0_28] : memref<4x1xf32, #tpu.memory_space<vmem>>, vector<4x1xf32>
    %143 = vector.broadcast %142 : vector<4x1xf32> to vector<4x256xf32>
    %144 = arith.addf %141, %143 : vector<4x256xf32>
    %145 = arith.maximumf %55, %144 : vector<4x256xf32>
    %c0_29 = arith.constant 0 : index
    %c0_30 = arith.constant 0 : index
    %146 = vector.load %arg6[%c0_29, %c0_30] : memref<4x25xf32, #tpu.memory_space<vmem>>, vector<4x25xf32>
    %cst_31 = arith.constant 0.000000e+00 : f32
    %147 = vector.broadcast %cst_31 : f32 to vector<4x256xf32>
    %cst_32 = arith.constant 0.000000e+00 : f32
    %148 = vector.broadcast %cst_32 : f32 to vector<4x34xf32>
    %149 = vector.extract_strided_slice %145 {offsets = [0, 0], sizes = [4, 222], strides = [1, 1]} : vector<4x256xf32> to vector<4x222xf32>
    %150 = tpu.concatenate %148, %149 in 1 : vector<4x34xf32>, vector<4x222xf32> -> vector<4x256xf32>
    %cst_33 = arith.constant 0.000000e+00 : f32
    %151 = vector.shape_cast %20 : vector<1x256xi1> to vector<1x256xi1>
    %152 = vector.broadcast %151 : vector<1x256xi1> to vector<4x256xi1>
    %153 = vector.broadcast %cst_33 : f32 to vector<4x256xf32>
    %154 = arith.select %152, %150, %153 : vector<4x256xi1>, vector<4x256xf32>
    %155 = vector.extract_strided_slice %146 {offsets = [0, 0], sizes = [4, 1], strides = [1, 1]} : vector<4x25xf32> to vector<4x1xf32>
    %156 = vector.broadcast %155 : vector<4x1xf32> to vector<4x256xf32>
    %157 = arith.mulf %156, %154 : vector<4x256xf32>
    %158 = arith.addf %147, %157 : vector<4x256xf32>
    %cst_34 = arith.constant 0.000000e+00 : f32
    %159 = vector.broadcast %cst_34 : f32 to vector<4x33xf32>
    %160 = vector.extract_strided_slice %145 {offsets = [0, 0], sizes = [4, 223], strides = [1, 1]} : vector<4x256xf32> to vector<4x223xf32>
    %161 = tpu.concatenate %159, %160 in 1 : vector<4x33xf32>, vector<4x223xf32> -> vector<4x256xf32>
    %cst_35 = arith.constant 0.000000e+00 : f32
    %162 = vector.shape_cast %22 : vector<1x256xi1> to vector<1x256xi1>
    %163 = vector.broadcast %162 : vector<1x256xi1> to vector<4x256xi1>
    %164 = vector.broadcast %cst_35 : f32 to vector<4x256xf32>
    %165 = arith.select %163, %161, %164 : vector<4x256xi1>, vector<4x256xf32>
    %166 = vector.extract_strided_slice %146 {offsets = [0, 1], sizes = [4, 1], strides = [1, 1]} : vector<4x25xf32> to vector<4x1xf32>
    %167 = vector.broadcast %166 : vector<4x1xf32> to vector<4x256xf32>
    %168 = arith.mulf %167, %165 : vector<4x256xf32>
    %169 = arith.addf %158, %168 : vector<4x256xf32>
    %cst_36 = arith.constant 0.000000e+00 : f32
    %170 = vector.broadcast %cst_36 : f32 to vector<4x32xf32>
    %171 = vector.extract_strided_slice %145 {offsets = [0, 0], sizes = [4, 224], strides = [1, 1]} : vector<4x256xf32> to vector<4x224xf32>
    %172 = tpu.concatenate %170, %171 in 1 : vector<4x32xf32>, vector<4x224xf32> -> vector<4x256xf32>
    %173 = vector.extract_strided_slice %146 {offsets = [0, 2], sizes = [4, 1], strides = [1, 1]} : vector<4x25xf32> to vector<4x1xf32>
    %174 = vector.broadcast %173 : vector<4x1xf32> to vector<4x256xf32>
    %175 = arith.mulf %174, %172 : vector<4x256xf32>
    %176 = arith.addf %169, %175 : vector<4x256xf32>
    %cst_37 = arith.constant 0.000000e+00 : f32
    %177 = vector.broadcast %cst_37 : f32 to vector<4x31xf32>
    %178 = vector.extract_strided_slice %145 {offsets = [0, 0], sizes = [4, 225], strides = [1, 1]} : vector<4x256xf32> to vector<4x225xf32>
    %179 = tpu.concatenate %177, %178 in 1 : vector<4x31xf32>, vector<4x225xf32> -> vector<4x256xf32>
    %cst_38 = arith.constant 0.000000e+00 : f32
    %180 = vector.shape_cast %24 : vector<1x256xi1> to vector<1x256xi1>
    %181 = vector.broadcast %180 : vector<1x256xi1> to vector<4x256xi1>
    %182 = vector.broadcast %cst_38 : f32 to vector<4x256xf32>
    %183 = arith.select %181, %179, %182 : vector<4x256xi1>, vector<4x256xf32>
    %184 = vector.extract_strided_slice %146 {offsets = [0, 3], sizes = [4, 1], strides = [1, 1]} : vector<4x25xf32> to vector<4x1xf32>
    %185 = vector.broadcast %184 : vector<4x1xf32> to vector<4x256xf32>
    %186 = arith.mulf %185, %183 : vector<4x256xf32>
    %187 = arith.addf %176, %186 : vector<4x256xf32>
    %cst_39 = arith.constant 0.000000e+00 : f32
    %188 = vector.broadcast %cst_39 : f32 to vector<4x30xf32>
    %189 = vector.extract_strided_slice %145 {offsets = [0, 0], sizes = [4, 226], strides = [1, 1]} : vector<4x256xf32> to vector<4x226xf32>
    %190 = tpu.concatenate %188, %189 in 1 : vector<4x30xf32>, vector<4x226xf32> -> vector<4x256xf32>
    %cst_40 = arith.constant 0.000000e+00 : f32
    %191 = vector.shape_cast %26 : vector<1x256xi1> to vector<1x256xi1>
    %192 = vector.broadcast %191 : vector<1x256xi1> to vector<4x256xi1>
    %193 = vector.broadcast %cst_40 : f32 to vector<4x256xf32>
    %194 = arith.select %192, %190, %193 : vector<4x256xi1>, vector<4x256xf32>
    %195 = vector.extract_strided_slice %146 {offsets = [0, 4], sizes = [4, 1], strides = [1, 1]} : vector<4x25xf32> to vector<4x1xf32>
    %196 = vector.broadcast %195 : vector<4x1xf32> to vector<4x256xf32>
    %197 = arith.mulf %196, %194 : vector<4x256xf32>
    %198 = arith.addf %187, %197 : vector<4x256xf32>
    %cst_41 = arith.constant 0.000000e+00 : f32
    %199 = vector.broadcast %cst_41 : f32 to vector<4x18xf32>
    %200 = vector.extract_strided_slice %145 {offsets = [0, 0], sizes = [4, 238], strides = [1, 1]} : vector<4x256xf32> to vector<4x238xf32>
    %201 = tpu.concatenate %199, %200 in 1 : vector<4x18xf32>, vector<4x238xf32> -> vector<4x256xf32>
    %cst_42 = arith.constant 0.000000e+00 : f32
    %202 = vector.shape_cast %20 : vector<1x256xi1> to vector<1x256xi1>
    %203 = vector.broadcast %202 : vector<1x256xi1> to vector<4x256xi1>
    %204 = vector.broadcast %cst_42 : f32 to vector<4x256xf32>
    %205 = arith.select %203, %201, %204 : vector<4x256xi1>, vector<4x256xf32>
    %206 = vector.extract_strided_slice %146 {offsets = [0, 5], sizes = [4, 1], strides = [1, 1]} : vector<4x25xf32> to vector<4x1xf32>
    %207 = vector.broadcast %206 : vector<4x1xf32> to vector<4x256xf32>
    %208 = arith.mulf %207, %205 : vector<4x256xf32>
    %209 = arith.addf %198, %208 : vector<4x256xf32>
    %cst_43 = arith.constant 0.000000e+00 : f32
    %210 = vector.broadcast %cst_43 : f32 to vector<4x17xf32>
    %211 = vector.extract_strided_slice %145 {offsets = [0, 0], sizes = [4, 239], strides = [1, 1]} : vector<4x256xf32> to vector<4x239xf32>
    %212 = tpu.concatenate %210, %211 in 1 : vector<4x17xf32>, vector<4x239xf32> -> vector<4x256xf32>
    %cst_44 = arith.constant 0.000000e+00 : f32
    %213 = vector.shape_cast %22 : vector<1x256xi1> to vector<1x256xi1>
    %214 = vector.broadcast %213 : vector<1x256xi1> to vector<4x256xi1>
    %215 = vector.broadcast %cst_44 : f32 to vector<4x256xf32>
    %216 = arith.select %214, %212, %215 : vector<4x256xi1>, vector<4x256xf32>
    %217 = vector.extract_strided_slice %146 {offsets = [0, 6], sizes = [4, 1], strides = [1, 1]} : vector<4x25xf32> to vector<4x1xf32>
    %218 = vector.broadcast %217 : vector<4x1xf32> to vector<4x256xf32>
    %219 = arith.mulf %218, %216 : vector<4x256xf32>
    %220 = arith.addf %209, %219 : vector<4x256xf32>
    %cst_45 = arith.constant 0.000000e+00 : f32
    %221 = vector.broadcast %cst_45 : f32 to vector<4x16xf32>
    %222 = vector.extract_strided_slice %145 {offsets = [0, 0], sizes = [4, 240], strides = [1, 1]} : vector<4x256xf32> to vector<4x240xf32>
    %223 = tpu.concatenate %221, %222 in 1 : vector<4x16xf32>, vector<4x240xf32> -> vector<4x256xf32>
    %224 = vector.extract_strided_slice %146 {offsets = [0, 7], sizes = [4, 1], strides = [1, 1]} : vector<4x25xf32> to vector<4x1xf32>
    %225 = vector.broadcast %224 : vector<4x1xf32> to vector<4x256xf32>
    %226 = arith.mulf %225, %223 : vector<4x256xf32>
    %227 = arith.addf %220, %226 : vector<4x256xf32>
    %cst_46 = arith.constant 0.000000e+00 : f32
    %228 = vector.broadcast %cst_46 : f32 to vector<4x15xf32>
    %229 = vector.extract_strided_slice %145 {offsets = [0, 0], sizes = [4, 241], strides = [1, 1]} : vector<4x256xf32> to vector<4x241xf32>
    %230 = tpu.concatenate %228, %229 in 1 : vector<4x15xf32>, vector<4x241xf32> -> vector<4x256xf32>
    %cst_47 = arith.constant 0.000000e+00 : f32
    %231 = vector.shape_cast %24 : vector<1x256xi1> to vector<1x256xi1>
    %232 = vector.broadcast %231 : vector<1x256xi1> to vector<4x256xi1>
    %233 = vector.broadcast %cst_47 : f32 to vector<4x256xf32>
    %234 = arith.select %232, %230, %233 : vector<4x256xi1>, vector<4x256xf32>
    %235 = vector.extract_strided_slice %146 {offsets = [0, 8], sizes = [4, 1], strides = [1, 1]} : vector<4x25xf32> to vector<4x1xf32>
    %236 = vector.broadcast %235 : vector<4x1xf32> to vector<4x256xf32>
    %237 = arith.mulf %236, %234 : vector<4x256xf32>
    %238 = arith.addf %227, %237 : vector<4x256xf32>
    %cst_48 = arith.constant 0.000000e+00 : f32
    %239 = vector.broadcast %cst_48 : f32 to vector<4x14xf32>
    %240 = vector.extract_strided_slice %145 {offsets = [0, 0], sizes = [4, 242], strides = [1, 1]} : vector<4x256xf32> to vector<4x242xf32>
    %241 = tpu.concatenate %239, %240 in 1 : vector<4x14xf32>, vector<4x242xf32> -> vector<4x256xf32>
    %cst_49 = arith.constant 0.000000e+00 : f32
    %242 = vector.shape_cast %26 : vector<1x256xi1> to vector<1x256xi1>
    %243 = vector.broadcast %242 : vector<1x256xi1> to vector<4x256xi1>
    %244 = vector.broadcast %cst_49 : f32 to vector<4x256xf32>
    %245 = arith.select %243, %241, %244 : vector<4x256xi1>, vector<4x256xf32>
    %246 = vector.extract_strided_slice %146 {offsets = [0, 9], sizes = [4, 1], strides = [1, 1]} : vector<4x25xf32> to vector<4x1xf32>
    %247 = vector.broadcast %246 : vector<4x1xf32> to vector<4x256xf32>
    %248 = arith.mulf %247, %245 : vector<4x256xf32>
    %249 = arith.addf %238, %248 : vector<4x256xf32>
    %cst_50 = arith.constant 0.000000e+00 : f32
    %250 = vector.broadcast %cst_50 : f32 to vector<4x2xf32>
    %251 = vector.extract_strided_slice %145 {offsets = [0, 0], sizes = [4, 254], strides = [1, 1]} : vector<4x256xf32> to vector<4x254xf32>
    %252 = tpu.concatenate %250, %251 in 1 : vector<4x2xf32>, vector<4x254xf32> -> vector<4x256xf32>
    %cst_51 = arith.constant 0.000000e+00 : f32
    %253 = vector.shape_cast %20 : vector<1x256xi1> to vector<1x256xi1>
    %254 = vector.broadcast %253 : vector<1x256xi1> to vector<4x256xi1>
    %255 = vector.broadcast %cst_51 : f32 to vector<4x256xf32>
    %256 = arith.select %254, %252, %255 : vector<4x256xi1>, vector<4x256xf32>
    %257 = vector.extract_strided_slice %146 {offsets = [0, 10], sizes = [4, 1], strides = [1, 1]} : vector<4x25xf32> to vector<4x1xf32>
    %258 = vector.broadcast %257 : vector<4x1xf32> to vector<4x256xf32>
    %259 = arith.mulf %258, %256 : vector<4x256xf32>
    %260 = arith.addf %249, %259 : vector<4x256xf32>
    %cst_52 = arith.constant 0.000000e+00 : f32
    %261 = vector.broadcast %cst_52 : f32 to vector<4x1xf32>
    %262 = vector.extract_strided_slice %145 {offsets = [0, 0], sizes = [4, 255], strides = [1, 1]} : vector<4x256xf32> to vector<4x255xf32>
    %263 = tpu.concatenate %261, %262 in 1 : vector<4x1xf32>, vector<4x255xf32> -> vector<4x256xf32>
    %cst_53 = arith.constant 0.000000e+00 : f32
    %264 = vector.shape_cast %22 : vector<1x256xi1> to vector<1x256xi1>
    %265 = vector.broadcast %264 : vector<1x256xi1> to vector<4x256xi1>
    %266 = vector.broadcast %cst_53 : f32 to vector<4x256xf32>
    %267 = arith.select %265, %263, %266 : vector<4x256xi1>, vector<4x256xf32>
    %268 = vector.extract_strided_slice %146 {offsets = [0, 11], sizes = [4, 1], strides = [1, 1]} : vector<4x25xf32> to vector<4x1xf32>
    %269 = vector.broadcast %268 : vector<4x1xf32> to vector<4x256xf32>
    %270 = arith.mulf %269, %267 : vector<4x256xf32>
    %271 = arith.addf %260, %270 : vector<4x256xf32>
    %272 = vector.extract_strided_slice %146 {offsets = [0, 12], sizes = [4, 1], strides = [1, 1]} : vector<4x25xf32> to vector<4x1xf32>
    %273 = vector.broadcast %272 : vector<4x1xf32> to vector<4x256xf32>
    %274 = arith.mulf %273, %145 : vector<4x256xf32>
    %275 = arith.addf %271, %274 : vector<4x256xf32>
    %276 = vector.extract_strided_slice %145 {offsets = [0, 1], sizes = [4, 255], strides = [1, 1]} : vector<4x256xf32> to vector<4x255xf32>
    %cst_54 = arith.constant 0.000000e+00 : f32
    %277 = vector.broadcast %cst_54 : f32 to vector<4x1xf32>
    %278 = tpu.concatenate %276, %277 in 1 : vector<4x255xf32>, vector<4x1xf32> -> vector<4x256xf32>
    %cst_55 = arith.constant 0.000000e+00 : f32
    %279 = vector.shape_cast %24 : vector<1x256xi1> to vector<1x256xi1>
    %280 = vector.broadcast %279 : vector<1x256xi1> to vector<4x256xi1>
    %281 = vector.broadcast %cst_55 : f32 to vector<4x256xf32>
    %282 = arith.select %280, %278, %281 : vector<4x256xi1>, vector<4x256xf32>
    %283 = vector.extract_strided_slice %146 {offsets = [0, 13], sizes = [4, 1], strides = [1, 1]} : vector<4x25xf32> to vector<4x1xf32>
    %284 = vector.broadcast %283 : vector<4x1xf32> to vector<4x256xf32>
    %285 = arith.mulf %284, %282 : vector<4x256xf32>
    %286 = arith.addf %275, %285 : vector<4x256xf32>
    %287 = vector.extract_strided_slice %145 {offsets = [0, 2], sizes = [4, 254], strides = [1, 1]} : vector<4x256xf32> to vector<4x254xf32>
    %cst_56 = arith.constant 0.000000e+00 : f32
    %288 = vector.broadcast %cst_56 : f32 to vector<4x2xf32>
    %289 = tpu.concatenate %287, %288 in 1 : vector<4x254xf32>, vector<4x2xf32> -> vector<4x256xf32>
    %cst_57 = arith.constant 0.000000e+00 : f32
    %290 = vector.shape_cast %26 : vector<1x256xi1> to vector<1x256xi1>
    %291 = vector.broadcast %290 : vector<1x256xi1> to vector<4x256xi1>
    %292 = vector.broadcast %cst_57 : f32 to vector<4x256xf32>
    %293 = arith.select %291, %289, %292 : vector<4x256xi1>, vector<4x256xf32>
    %294 = vector.extract_strided_slice %146 {offsets = [0, 14], sizes = [4, 1], strides = [1, 1]} : vector<4x25xf32> to vector<4x1xf32>
    %295 = vector.broadcast %294 : vector<4x1xf32> to vector<4x256xf32>
    %296 = arith.mulf %295, %293 : vector<4x256xf32>
    %297 = arith.addf %286, %296 : vector<4x256xf32>
    %298 = vector.extract_strided_slice %145 {offsets = [0, 14], sizes = [4, 242], strides = [1, 1]} : vector<4x256xf32> to vector<4x242xf32>
    %cst_58 = arith.constant 0.000000e+00 : f32
    %299 = vector.broadcast %cst_58 : f32 to vector<4x14xf32>
    %300 = tpu.concatenate %298, %299 in 1 : vector<4x242xf32>, vector<4x14xf32> -> vector<4x256xf32>
    %cst_59 = arith.constant 0.000000e+00 : f32
    %301 = vector.shape_cast %20 : vector<1x256xi1> to vector<1x256xi1>
    %302 = vector.broadcast %301 : vector<1x256xi1> to vector<4x256xi1>
    %303 = vector.broadcast %cst_59 : f32 to vector<4x256xf32>
    %304 = arith.select %302, %300, %303 : vector<4x256xi1>, vector<4x256xf32>
    %305 = vector.extract_strided_slice %146 {offsets = [0, 15], sizes = [4, 1], strides = [1, 1]} : vector<4x25xf32> to vector<4x1xf32>
    %306 = vector.broadcast %305 : vector<4x1xf32> to vector<4x256xf32>
    %307 = arith.mulf %306, %304 : vector<4x256xf32>
    %308 = arith.addf %297, %307 : vector<4x256xf32>
    %309 = vector.extract_strided_slice %145 {offsets = [0, 15], sizes = [4, 241], strides = [1, 1]} : vector<4x256xf32> to vector<4x241xf32>
    %cst_60 = arith.constant 0.000000e+00 : f32
    %310 = vector.broadcast %cst_60 : f32 to vector<4x15xf32>
    %311 = tpu.concatenate %309, %310 in 1 : vector<4x241xf32>, vector<4x15xf32> -> vector<4x256xf32>
    %cst_61 = arith.constant 0.000000e+00 : f32
    %312 = vector.shape_cast %22 : vector<1x256xi1> to vector<1x256xi1>
    %313 = vector.broadcast %312 : vector<1x256xi1> to vector<4x256xi1>
    %314 = vector.broadcast %cst_61 : f32 to vector<4x256xf32>
    %315 = arith.select %313, %311, %314 : vector<4x256xi1>, vector<4x256xf32>
    %316 = vector.extract_strided_slice %146 {offsets = [0, 16], sizes = [4, 1], strides = [1, 1]} : vector<4x25xf32> to vector<4x1xf32>
    %317 = vector.broadcast %316 : vector<4x1xf32> to vector<4x256xf32>
    %318 = arith.mulf %317, %315 : vector<4x256xf32>
    %319 = arith.addf %308, %318 : vector<4x256xf32>
    %320 = vector.extract_strided_slice %145 {offsets = [0, 16], sizes = [4, 240], strides = [1, 1]} : vector<4x256xf32> to vector<4x240xf32>
    %cst_62 = arith.constant 0.000000e+00 : f32
    %321 = vector.broadcast %cst_62 : f32 to vector<4x16xf32>
    %322 = tpu.concatenate %320, %321 in 1 : vector<4x240xf32>, vector<4x16xf32> -> vector<4x256xf32>
    %323 = vector.extract_strided_slice %146 {offsets = [0, 17], sizes = [4, 1], strides = [1, 1]} : vector<4x25xf32> to vector<4x1xf32>
    %324 = vector.broadcast %323 : vector<4x1xf32> to vector<4x256xf32>
    %325 = arith.mulf %324, %322 : vector<4x256xf32>
    %326 = arith.addf %319, %325 : vector<4x256xf32>
    %327 = vector.extract_strided_slice %145 {offsets = [0, 17], sizes = [4, 239], strides = [1, 1]} : vector<4x256xf32> to vector<4x239xf32>
    %cst_63 = arith.constant 0.000000e+00 : f32
    %328 = vector.broadcast %cst_63 : f32 to vector<4x17xf32>
    %329 = tpu.concatenate %327, %328 in 1 : vector<4x239xf32>, vector<4x17xf32> -> vector<4x256xf32>
    %cst_64 = arith.constant 0.000000e+00 : f32
    %330 = vector.shape_cast %24 : vector<1x256xi1> to vector<1x256xi1>
    %331 = vector.broadcast %330 : vector<1x256xi1> to vector<4x256xi1>
    %332 = vector.broadcast %cst_64 : f32 to vector<4x256xf32>
    %333 = arith.select %331, %329, %332 : vector<4x256xi1>, vector<4x256xf32>
    %334 = vector.extract_strided_slice %146 {offsets = [0, 18], sizes = [4, 1], strides = [1, 1]} : vector<4x25xf32> to vector<4x1xf32>
    %335 = vector.broadcast %334 : vector<4x1xf32> to vector<4x256xf32>
    %336 = arith.mulf %335, %333 : vector<4x256xf32>
    %337 = arith.addf %326, %336 : vector<4x256xf32>
    %338 = vector.extract_strided_slice %145 {offsets = [0, 18], sizes = [4, 238], strides = [1, 1]} : vector<4x256xf32> to vector<4x238xf32>
    %cst_65 = arith.constant 0.000000e+00 : f32
    %339 = vector.broadcast %cst_65 : f32 to vector<4x18xf32>
    %340 = tpu.concatenate %338, %339 in 1 : vector<4x238xf32>, vector<4x18xf32> -> vector<4x256xf32>
    %cst_66 = arith.constant 0.000000e+00 : f32
    %341 = vector.shape_cast %26 : vector<1x256xi1> to vector<1x256xi1>
    %342 = vector.broadcast %341 : vector<1x256xi1> to vector<4x256xi1>
    %343 = vector.broadcast %cst_66 : f32 to vector<4x256xf32>
    %344 = arith.select %342, %340, %343 : vector<4x256xi1>, vector<4x256xf32>
    %345 = vector.extract_strided_slice %146 {offsets = [0, 19], sizes = [4, 1], strides = [1, 1]} : vector<4x25xf32> to vector<4x1xf32>
    %346 = vector.broadcast %345 : vector<4x1xf32> to vector<4x256xf32>
    %347 = arith.mulf %346, %344 : vector<4x256xf32>
    %348 = arith.addf %337, %347 : vector<4x256xf32>
    %349 = vector.extract_strided_slice %145 {offsets = [0, 30], sizes = [4, 226], strides = [1, 1]} : vector<4x256xf32> to vector<4x226xf32>
    %cst_67 = arith.constant 0.000000e+00 : f32
    %350 = vector.broadcast %cst_67 : f32 to vector<4x30xf32>
    %351 = tpu.concatenate %349, %350 in 1 : vector<4x226xf32>, vector<4x30xf32> -> vector<4x256xf32>
    %cst_68 = arith.constant 0.000000e+00 : f32
    %352 = vector.shape_cast %20 : vector<1x256xi1> to vector<1x256xi1>
    %353 = vector.broadcast %352 : vector<1x256xi1> to vector<4x256xi1>
    %354 = vector.broadcast %cst_68 : f32 to vector<4x256xf32>
    %355 = arith.select %353, %351, %354 : vector<4x256xi1>, vector<4x256xf32>
    %356 = vector.extract_strided_slice %146 {offsets = [0, 20], sizes = [4, 1], strides = [1, 1]} : vector<4x25xf32> to vector<4x1xf32>
    %357 = vector.broadcast %356 : vector<4x1xf32> to vector<4x256xf32>
    %358 = arith.mulf %357, %355 : vector<4x256xf32>
    %359 = arith.addf %348, %358 : vector<4x256xf32>
    %360 = vector.extract_strided_slice %145 {offsets = [0, 31], sizes = [4, 225], strides = [1, 1]} : vector<4x256xf32> to vector<4x225xf32>
    %cst_69 = arith.constant 0.000000e+00 : f32
    %361 = vector.broadcast %cst_69 : f32 to vector<4x31xf32>
    %362 = tpu.concatenate %360, %361 in 1 : vector<4x225xf32>, vector<4x31xf32> -> vector<4x256xf32>
    %cst_70 = arith.constant 0.000000e+00 : f32
    %363 = vector.shape_cast %22 : vector<1x256xi1> to vector<1x256xi1>
    %364 = vector.broadcast %363 : vector<1x256xi1> to vector<4x256xi1>
    %365 = vector.broadcast %cst_70 : f32 to vector<4x256xf32>
    %366 = arith.select %364, %362, %365 : vector<4x256xi1>, vector<4x256xf32>
    %367 = vector.extract_strided_slice %146 {offsets = [0, 21], sizes = [4, 1], strides = [1, 1]} : vector<4x25xf32> to vector<4x1xf32>
    %368 = vector.broadcast %367 : vector<4x1xf32> to vector<4x256xf32>
    %369 = arith.mulf %368, %366 : vector<4x256xf32>
    %370 = arith.addf %359, %369 : vector<4x256xf32>
    %371 = vector.extract_strided_slice %145 {offsets = [0, 32], sizes = [4, 224], strides = [1, 1]} : vector<4x256xf32> to vector<4x224xf32>
    %cst_71 = arith.constant 0.000000e+00 : f32
    %372 = vector.broadcast %cst_71 : f32 to vector<4x32xf32>
    %373 = tpu.concatenate %371, %372 in 1 : vector<4x224xf32>, vector<4x32xf32> -> vector<4x256xf32>
    %374 = vector.extract_strided_slice %146 {offsets = [0, 22], sizes = [4, 1], strides = [1, 1]} : vector<4x25xf32> to vector<4x1xf32>
    %375 = vector.broadcast %374 : vector<4x1xf32> to vector<4x256xf32>
    %376 = arith.mulf %375, %373 : vector<4x256xf32>
    %377 = arith.addf %370, %376 : vector<4x256xf32>
    %378 = vector.extract_strided_slice %145 {offsets = [0, 33], sizes = [4, 223], strides = [1, 1]} : vector<4x256xf32> to vector<4x223xf32>
    %cst_72 = arith.constant 0.000000e+00 : f32
    %379 = vector.broadcast %cst_72 : f32 to vector<4x33xf32>
    %380 = tpu.concatenate %378, %379 in 1 : vector<4x223xf32>, vector<4x33xf32> -> vector<4x256xf32>
    %cst_73 = arith.constant 0.000000e+00 : f32
    %381 = vector.shape_cast %24 : vector<1x256xi1> to vector<1x256xi1>
    %382 = vector.broadcast %381 : vector<1x256xi1> to vector<4x256xi1>
    %383 = vector.broadcast %cst_73 : f32 to vector<4x256xf32>
    %384 = arith.select %382, %380, %383 : vector<4x256xi1>, vector<4x256xf32>
    %385 = vector.extract_strided_slice %146 {offsets = [0, 23], sizes = [4, 1], strides = [1, 1]} : vector<4x25xf32> to vector<4x1xf32>
    %386 = vector.broadcast %385 : vector<4x1xf32> to vector<4x256xf32>
    %387 = arith.mulf %386, %384 : vector<4x256xf32>
    %388 = arith.addf %377, %387 : vector<4x256xf32>
    %389 = vector.extract_strided_slice %145 {offsets = [0, 34], sizes = [4, 222], strides = [1, 1]} : vector<4x256xf32> to vector<4x222xf32>
    %cst_74 = arith.constant 0.000000e+00 : f32
    %390 = vector.broadcast %cst_74 : f32 to vector<4x34xf32>
    %391 = tpu.concatenate %389, %390 in 1 : vector<4x222xf32>, vector<4x34xf32> -> vector<4x256xf32>
    %cst_75 = arith.constant 0.000000e+00 : f32
    %392 = vector.shape_cast %26 : vector<1x256xi1> to vector<1x256xi1>
    %393 = vector.broadcast %392 : vector<1x256xi1> to vector<4x256xi1>
    %394 = vector.broadcast %cst_75 : f32 to vector<4x256xf32>
    %395 = arith.select %393, %391, %394 : vector<4x256xi1>, vector<4x256xf32>
    %396 = vector.extract_strided_slice %146 {offsets = [0, 24], sizes = [4, 1], strides = [1, 1]} : vector<4x25xf32> to vector<4x1xf32>
    %397 = vector.broadcast %396 : vector<4x1xf32> to vector<4x256xf32>
    %398 = arith.mulf %397, %395 : vector<4x256xf32>
    %399 = arith.addf %388, %398 : vector<4x256xf32>
    %c0_76 = arith.constant 0 : index
    %c0_77 = arith.constant 0 : index
    %400 = vector.load %arg7[%c0_76, %c0_77] : memref<4x1xf32, #tpu.memory_space<vmem>>, vector<4x1xf32>
    %401 = vector.broadcast %400 : vector<4x1xf32> to vector<4x256xf32>
    %402 = arith.addf %399, %401 : vector<4x256xf32>
    %c0_78 = arith.constant 0 : index
    %c0_79 = arith.constant 0 : index
    %403 = vector.load %arg8[%c0_78, %c0_79] : memref<4x9xf32, #tpu.memory_space<vmem>>, vector<4x9xf32>
    %cst_80 = arith.constant 0.000000e+00 : f32
    %404 = vector.broadcast %cst_80 : f32 to vector<4x256xf32>
    %cst_81 = arith.constant 0.000000e+00 : f32
    %405 = vector.broadcast %cst_81 : f32 to vector<4x17xf32>
    %406 = vector.extract_strided_slice %402 {offsets = [0, 0], sizes = [4, 239], strides = [1, 1]} : vector<4x256xf32> to vector<4x239xf32>
    %407 = tpu.concatenate %405, %406 in 1 : vector<4x17xf32>, vector<4x239xf32> -> vector<4x256xf32>
    %cst_82 = arith.constant 0.000000e+00 : f32
    %408 = vector.shape_cast %22 : vector<1x256xi1> to vector<1x256xi1>
    %409 = vector.broadcast %408 : vector<1x256xi1> to vector<4x256xi1>
    %410 = vector.broadcast %cst_82 : f32 to vector<4x256xf32>
    %411 = arith.select %409, %407, %410 : vector<4x256xi1>, vector<4x256xf32>
    %412 = vector.extract_strided_slice %403 {offsets = [0, 0], sizes = [4, 1], strides = [1, 1]} : vector<4x9xf32> to vector<4x1xf32>
    %413 = vector.broadcast %412 : vector<4x1xf32> to vector<4x256xf32>
    %414 = arith.mulf %413, %411 : vector<4x256xf32>
    %415 = arith.addf %404, %414 : vector<4x256xf32>
    %cst_83 = arith.constant 0.000000e+00 : f32
    %416 = vector.broadcast %cst_83 : f32 to vector<4x16xf32>
    %417 = vector.extract_strided_slice %402 {offsets = [0, 0], sizes = [4, 240], strides = [1, 1]} : vector<4x256xf32> to vector<4x240xf32>
    %418 = tpu.concatenate %416, %417 in 1 : vector<4x16xf32>, vector<4x240xf32> -> vector<4x256xf32>
    %419 = vector.extract_strided_slice %403 {offsets = [0, 1], sizes = [4, 1], strides = [1, 1]} : vector<4x9xf32> to vector<4x1xf32>
    %420 = vector.broadcast %419 : vector<4x1xf32> to vector<4x256xf32>
    %421 = arith.mulf %420, %418 : vector<4x256xf32>
    %422 = arith.addf %415, %421 : vector<4x256xf32>
    %cst_84 = arith.constant 0.000000e+00 : f32
    %423 = vector.broadcast %cst_84 : f32 to vector<4x15xf32>
    %424 = vector.extract_strided_slice %402 {offsets = [0, 0], sizes = [4, 241], strides = [1, 1]} : vector<4x256xf32> to vector<4x241xf32>
    %425 = tpu.concatenate %423, %424 in 1 : vector<4x15xf32>, vector<4x241xf32> -> vector<4x256xf32>
    %cst_85 = arith.constant 0.000000e+00 : f32
    %426 = vector.shape_cast %24 : vector<1x256xi1> to vector<1x256xi1>
    %427 = vector.broadcast %426 : vector<1x256xi1> to vector<4x256xi1>
    %428 = vector.broadcast %cst_85 : f32 to vector<4x256xf32>
    %429 = arith.select %427, %425, %428 : vector<4x256xi1>, vector<4x256xf32>
    %430 = vector.extract_strided_slice %403 {offsets = [0, 2], sizes = [4, 1], strides = [1, 1]} : vector<4x9xf32> to vector<4x1xf32>
    %431 = vector.broadcast %430 : vector<4x1xf32> to vector<4x256xf32>
    %432 = arith.mulf %431, %429 : vector<4x256xf32>
    %433 = arith.addf %422, %432 : vector<4x256xf32>
    %cst_86 = arith.constant 0.000000e+00 : f32
    %434 = vector.broadcast %cst_86 : f32 to vector<4x1xf32>
    %435 = vector.extract_strided_slice %402 {offsets = [0, 0], sizes = [4, 255], strides = [1, 1]} : vector<4x256xf32> to vector<4x255xf32>
    %436 = tpu.concatenate %434, %435 in 1 : vector<4x1xf32>, vector<4x255xf32> -> vector<4x256xf32>
    %cst_87 = arith.constant 0.000000e+00 : f32
    %437 = vector.shape_cast %22 : vector<1x256xi1> to vector<1x256xi1>
    %438 = vector.broadcast %437 : vector<1x256xi1> to vector<4x256xi1>
    %439 = vector.broadcast %cst_87 : f32 to vector<4x256xf32>
    %440 = arith.select %438, %436, %439 : vector<4x256xi1>, vector<4x256xf32>
    %441 = vector.extract_strided_slice %403 {offsets = [0, 3], sizes = [4, 1], strides = [1, 1]} : vector<4x9xf32> to vector<4x1xf32>
    %442 = vector.broadcast %441 : vector<4x1xf32> to vector<4x256xf32>
    %443 = arith.mulf %442, %440 : vector<4x256xf32>
    %444 = arith.addf %433, %443 : vector<4x256xf32>
    %445 = vector.extract_strided_slice %403 {offsets = [0, 4], sizes = [4, 1], strides = [1, 1]} : vector<4x9xf32> to vector<4x1xf32>
    %446 = vector.broadcast %445 : vector<4x1xf32> to vector<4x256xf32>
    %447 = arith.mulf %446, %402 : vector<4x256xf32>
    %448 = arith.addf %444, %447 : vector<4x256xf32>
    %449 = vector.extract_strided_slice %402 {offsets = [0, 1], sizes = [4, 255], strides = [1, 1]} : vector<4x256xf32> to vector<4x255xf32>
    %cst_88 = arith.constant 0.000000e+00 : f32
    %450 = vector.broadcast %cst_88 : f32 to vector<4x1xf32>
    %451 = tpu.concatenate %449, %450 in 1 : vector<4x255xf32>, vector<4x1xf32> -> vector<4x256xf32>
    %cst_89 = arith.constant 0.000000e+00 : f32
    %452 = vector.shape_cast %24 : vector<1x256xi1> to vector<1x256xi1>
    %453 = vector.broadcast %452 : vector<1x256xi1> to vector<4x256xi1>
    %454 = vector.broadcast %cst_89 : f32 to vector<4x256xf32>
    %455 = arith.select %453, %451, %454 : vector<4x256xi1>, vector<4x256xf32>
    %456 = vector.extract_strided_slice %403 {offsets = [0, 5], sizes = [4, 1], strides = [1, 1]} : vector<4x9xf32> to vector<4x1xf32>
    %457 = vector.broadcast %456 : vector<4x1xf32> to vector<4x256xf32>
    %458 = arith.mulf %457, %455 : vector<4x256xf32>
    %459 = arith.addf %448, %458 : vector<4x256xf32>
    %460 = vector.extract_strided_slice %402 {offsets = [0, 15], sizes = [4, 241], strides = [1, 1]} : vector<4x256xf32> to vector<4x241xf32>
    %cst_90 = arith.constant 0.000000e+00 : f32
    %461 = vector.broadcast %cst_90 : f32 to vector<4x15xf32>
    %462 = tpu.concatenate %460, %461 in 1 : vector<4x241xf32>, vector<4x15xf32> -> vector<4x256xf32>
    %cst_91 = arith.constant 0.000000e+00 : f32
    %463 = vector.shape_cast %22 : vector<1x256xi1> to vector<1x256xi1>
    %464 = vector.broadcast %463 : vector<1x256xi1> to vector<4x256xi1>
    %465 = vector.broadcast %cst_91 : f32 to vector<4x256xf32>
    %466 = arith.select %464, %462, %465 : vector<4x256xi1>, vector<4x256xf32>
    %467 = vector.extract_strided_slice %403 {offsets = [0, 6], sizes = [4, 1], strides = [1, 1]} : vector<4x9xf32> to vector<4x1xf32>
    %468 = vector.broadcast %467 : vector<4x1xf32> to vector<4x256xf32>
    %469 = arith.mulf %468, %466 : vector<4x256xf32>
    %470 = arith.addf %459, %469 : vector<4x256xf32>
    %471 = vector.extract_strided_slice %402 {offsets = [0, 16], sizes = [4, 240], strides = [1, 1]} : vector<4x256xf32> to vector<4x240xf32>
    %cst_92 = arith.constant 0.000000e+00 : f32
    %472 = vector.broadcast %cst_92 : f32 to vector<4x16xf32>
    %473 = tpu.concatenate %471, %472 in 1 : vector<4x240xf32>, vector<4x16xf32> -> vector<4x256xf32>
    %474 = vector.extract_strided_slice %403 {offsets = [0, 7], sizes = [4, 1], strides = [1, 1]} : vector<4x9xf32> to vector<4x1xf32>
    %475 = vector.broadcast %474 : vector<4x1xf32> to vector<4x256xf32>
    %476 = arith.mulf %475, %473 : vector<4x256xf32>
    %477 = arith.addf %470, %476 : vector<4x256xf32>
    %478 = vector.extract_strided_slice %402 {offsets = [0, 17], sizes = [4, 239], strides = [1, 1]} : vector<4x256xf32> to vector<4x239xf32>
    %cst_93 = arith.constant 0.000000e+00 : f32
    %479 = vector.broadcast %cst_93 : f32 to vector<4x17xf32>
    %480 = tpu.concatenate %478, %479 in 1 : vector<4x239xf32>, vector<4x17xf32> -> vector<4x256xf32>
    %cst_94 = arith.constant 0.000000e+00 : f32
    %481 = vector.shape_cast %24 : vector<1x256xi1> to vector<1x256xi1>
    %482 = vector.broadcast %481 : vector<1x256xi1> to vector<4x256xi1>
    %483 = vector.broadcast %cst_94 : f32 to vector<4x256xf32>
    %484 = arith.select %482, %480, %483 : vector<4x256xi1>, vector<4x256xf32>
    %485 = vector.extract_strided_slice %403 {offsets = [0, 8], sizes = [4, 1], strides = [1, 1]} : vector<4x9xf32> to vector<4x1xf32>
    %486 = vector.broadcast %485 : vector<4x1xf32> to vector<4x256xf32>
    %487 = arith.mulf %486, %484 : vector<4x256xf32>
    %488 = arith.addf %477, %487 : vector<4x256xf32>
    %c0_95 = arith.constant 0 : index
    %c0_96 = arith.constant 0 : index
    %489 = vector.load %arg9[%c0_95, %c0_96] : memref<4x1xf32, #tpu.memory_space<vmem>>, vector<4x1xf32>
    %490 = vector.broadcast %489 : vector<4x1xf32> to vector<4x256xf32>
    %491 = arith.addf %488, %490 : vector<4x256xf32>
    %492 = arith.maximumf %402, %491 : vector<4x256xf32>
    %493 = tpu.concatenate %145, %492 in 0 : vector<4x256xf32>, vector<4x256xf32> -> vector<8x256xf32>
    %c0_97 = arith.constant 0 : index
    %c0_98 = arith.constant 0 : index
    %c0_99 = arith.constant 0 : index
    %494 = vector.load %arg10[%c0_97, %c0_98, %c0_99] : memref<1x8x256xf32, #tpu.memory_space<vmem>>, vector<1x8x256xf32>
    %495 = vector.shape_cast %494 : vector<1x8x256xf32> to vector<8x256xf32>
    %496 = vector.shape_cast %493 : vector<8x256xf32> to vector<1x8x256xf32>
    tpu.vector_store %arg10[%c0_97, %c0_98, %c0_99], %496 {strides = array<i32>} : memref<1x8x256xf32, #tpu.memory_space<vmem>>, vector<1x8x256xf32>,
    return
  }
  func.func @transform_0(%arg0: i32) -> (i32, i32, i32) {
    %c0_i32 = arith.constant 0 : i32
    %c0_i32_0 = arith.constant 0 : i32
    %c0_i32_1 = arith.constant 0 : i32
    return %arg0, %c0_i32, %c0_i32_0 : i32, i32, i32
  }
  func.func @transform_1(%arg0: i32) -> (i32, i32) {
    %c0_i32 = arith.constant 0 : i32
    %c0_i32_0 = arith.constant 0 : i32
    %c0_i32_1 = arith.constant 0 : i32
    return %c0_i32, %c0_i32_0 : i32, i32
  }
  func.func @transform_2(%arg0: i32) -> (i32, i32) {
    %c0_i32 = arith.constant 0 : i32
    %c0_i32_0 = arith.constant 0 : i32
    %c0_i32_1 = arith.constant 0 : i32
    return %c0_i32, %c0_i32_0 : i32, i32
  }
  func.func @transform_3(%arg0: i32) -> (i32, i32) {
    %c0_i32 = arith.constant 0 : i32
    %c0_i32_0 = arith.constant 0 : i32
    %c0_i32_1 = arith.constant 0 : i32
    return %c0_i32, %c0_i32_0 : i32, i32
  }
  func.func @transform_4(%arg0: i32) -> (i32, i32) {
    %c0_i32 = arith.constant 0 : i32
    %c0_i32_0 = arith.constant 0 : i32
    %c0_i32_1 = arith.constant 0 : i32
    return %c0_i32, %c0_i32_0 : i32, i32
  }
  func.func @transform_5(%arg0: i32) -> (i32, i32) {
    %c0_i32 = arith.constant 0 : i32
    %c0_i32_0 = arith.constant 0 : i32
    %c0_i32_1 = arith.constant 0 : i32
    return %c0_i32, %c0_i32_0 : i32, i32
  }
  func.func @transform_6(%arg0: i32) -> (i32, i32) {
    %c0_i32 = arith.constant 0 : i32
    %c0_i32_0 = arith.constant 0 : i32
    %c0_i32_1 = arith.constant 0 : i32
    return %c0_i32, %c0_i32_0 : i32, i32
  }
  func.func @transform_7(%arg0: i32) -> (i32, i32) {
    %c0_i32 = arith.constant 0 : i32
    %c0_i32_0 = arith.constant 0 : i32
    %c0_i32_1 = arith.constant 0 : i32
    return %c0_i32, %c0_i32_0 : i32, i32
  }
  func.func @transform_8(%arg0: i32) -> (i32, i32) {
    %c0_i32 = arith.constant 0 : i32
    %c0_i32_0 = arith.constant 0 : i32
    %c0_i32_1 = arith.constant 0 : i32
    return %c0_i32, %c0_i32_0 : i32, i32
  }
  func.func @transform_9(%arg0: i32) -> (i32, i32, i32) {
    %c0_i32 = arith.constant 0 : i32
    %c0_i32_0 = arith.constant 0 : i32
    %c0_i32_1 = arith.constant 0 : i32
    return %arg0, %c0_i32, %c0_i32_0 : i32, i32, i32
  }
}

</mosaic_0001>

<bundles_post_ra>
// kernel: tpu_custom_call.1
= control target key start
LH: loop header
LB: loop body
LE: loop exit
PB: predicated region body
PF: predicated region fallthrough
CT: control target
= control target key end

     0   :  { %14 = vsyncpa [#allocation3], 0  ;;  %s2358_s0 = inlined_call_operand.vmem [shape: f32[2,4,256], index: 0, kind: input, shape index: {}]   ;;  %s2359_s1 = inlined_call_operand.vmem [shape: f32[4,4], index: 1, kind: input, shape index: {}]   ;;  %s2360_s2 = inlined_call_operand.vmem [shape: f32[4,1], index: 2, kind: input, shape index: {}]   ;;  %s2361_s3 = inlined_call_operand.vmem [shape: f32[4,9], index: 3, kind: input, shape index: {}]   ;;  %s2362_s4 = inlined_call_operand.vmem [shape: f32[4,1], index: 4, kind: input, shape index: {}]   ;;  %s2363_s5 = inlined_call_operand.vmem [shape: f32[4,25], index: 5, kind: input, shape index: {}]   ;;  %s2364_s6 = inlined_call_operand.vmem [shape: f32[4,1], index: 6, kind: input, shape index: {}]   ;;  %s2365_s7 = inlined_call_operand.vmem [shape: f32[4,9], index: 7, kind: input, shape index: {}]   ;;  %s2366_s8 = inlined_call_operand.vmem [shape: f32[4,1], index: 8, kind: input, shape index: {}]   ;;  %s2367_s9 = inlined_call_operand.hbm [shape: f32[2,8,256], index: 9, kind: output, shape index: {}]  }
   0x1   :  { %16 = vsyncpa [#allocation3 + $0x1], 0  ;;  %s1682_s30 = smov 0   ;;  %s1684_s10 = smov 0  }
   0x2   :  { %s1686_s11 = smov 0   ;;  %s1688_s12 = smov 0  }
   0x3 LB: > { %s1703_s13 = sadd.s32 4294967295, %s1580_s12   ;;  %s1375_s14 = sadd.s32 4294967294, %s1580_s12   ;;  %s1580_s12 = sphi %s1688_s12, %s2408_s12   ;;  %s1576_s11 = sphi %s1686_s11, %s2407_s11   ;;  %s1572_s10 = sphi %s1684_s10, %s2406_s10   ;;  %s1568_s30 = sphi %s1682_s30, %s2405_s30  }
   0x4   : > { %s1707_s15 = sadd.s32 1, %s1580_s12   ;;  %s223_s16 = sadd.s32 1, %s1576_s11 }
   0x5   : > { %s220_s17 = ssub.s32 %s1580_s12, %s1707_s15  ;;  %p233_p0 = scmp.ne.s32.totalorder %s1576_s11, %s1572_s10 }
   0x6   : > { %p221_p1 = scmp.eq.s32.totalorder %s220_s17, 0  ;;  %p234_p2 = scmp.eq.s32.totalorder %s1703_s13, 1 }
   0x7   : > { %p239_p3 = scmp.ne.s32.totalorder %s1572_s10, %s1568_s30  ;;  %p240_p4 = scmp.eq.s32.totalorder %s1375_s14, 1 }
   0x8   : > { %s1718_s18 = scalar_select %p221_p1, %s1576_s11, %s223_s16  }
   0x9   : > { %p1720_p5 = por %p234_p2, %p233_p0  ;;  %p1724_p6 = por %p240_p4, %p239_p3 }
   0xa   : > { %p1378_p7 = scmp.ge.s32.totalorder %s1580_s12, 1  ;;  %p290_p8 = scmp.lt.s32.totalorder %s1580_s12, 3 }
   0xc   : > { %p291_p9 = pnand %p1378_p7, %p290_p8 }
   0xd   : > { %v367_v0 = vld [vmem:[%s2359_s1] sm:$0xf] (!%p291_p9)  ;;  %v1582_v1 = vmov (!%p291_p9), 0   ;;  %v1583_v2 = vmov (!%p291_p9), 2   ;;  %v1584_v4 = vmov (!%p291_p9), 3   ;;  %v1585_v6 = vmov (!%p291_p9), 1  }
   0xe   : > { %294 = sbr.rel (%p291_p9) target bundleno = 836 (0x344), region = 56  ;;  %1477 = vset.pattern.permute.xlu0 (!%p291_p9), %v1582_v1  ;;  %1478 = vset.pattern.permute.xlu1 (!%p291_p9), %v1583_v2  ;;  %v482_v3 = vld [vmem:[%s2361_s3] sm:$0xf] (!%p291_p9)  ;;  %v1586_v8 = vmov (!%p291_p9), 4   ;;  %v1587_v9 = vmov (!%p291_p9), 5   ;;  %v1588_v11 = vmov (!%p291_p9), 11   ;;  %v332_v16 = vlaneseq (!%p291_p9) }
   0xf   : > { %370 = vperm.xlu0 (!%p291_p9), %1477, %v367_v0   ;;  %423 = vperm.xlu1 (!%p291_p9), %1478, %v367_v0   ;;  %v474_v5 = vld [vmem:[%s2360_s2] sm:$0xf] (!%p291_p9)  ;;  %v1589_v12 = vmov (!%p291_p9), 6   ;;  %v1590_v13 = vmov (!%p291_p9), 7   ;;  %v1591_v14 = vmov (!%p291_p9), 8   ;;  %v1592_v15 = vmov (!%p291_p9), 9  }
  0x10   : > { %v1747_v7 = vld [vmem:[%s2363_s5] sm:$0xf] (!%p291_p9)  ;;  %p326_p10 = scmp.lt.s32.totalorder (!%p291_p9), %s1703_s13, 1  ;;  %v375_v17 = vshrl.u32 (!%p291_p9), %v332_v16, 7  ;;  %s1593_s24 = smov (!%p291_p9), 17   ;;  %vm489_vm0 = vcmask (!%p291_p9), 138240  }
  0x11   : > { %v650_v10 = vld [vmem:[%s2362_s4] sm:$0xf] (!%p291_p9)  ;;  %s1594_s25 = smov (!%p291_p9), 16   ;;  %s1595_s26 = smov (!%p291_p9), 127   ;;  %vm530_vm1 = vcmask (!%p291_p9), 121856   ;;  %vm2379_vm3 = vcmask (!%p291_p9), 130048  }
  0x12   : > { %v376_v18 = vsub.s32 (!%p291_p9), 0, %v375_v17  ;;  %v380_v19 = vsub.s32 (!%p291_p9), 4, %v375_v17  ;;  %v402_v20 = vsub.s32 (!%p291_p9), 1, %v375_v17  ;;  %v406_v21 = vsub.s32 (!%p291_p9), 5, %v375_v17  ;;  %s2372_s27 = smov (!%p291_p9), 113   ;;  %s1597_s28 = smov (!%p291_p9), 15  }
  0x13   : > { %502 = vperm.xlu0 (!%p291_p9), %1477, %v482_v3   ;;  %1479 = vset.pattern.permute.xlu1 (!%p291_p9), %v1584_v4  ;;  %v428_v23 = vsub.s32 (!%p291_p9), 2, %v375_v17  ;;  %v432_v24 = vsub.s32 (!%p291_p9), 6, %v375_v17  ;;  %v454_v26 = vsub.s32 (!%p291_p9), 3, %v375_v17  ;;  %v458_v27 = vsub.s32 (!%p291_p9), 7, %v375_v17  ;;  %s1599_s29 = smov (!%p291_p9), 1   ;;  %s2370_s14 = smov (!%p291_p9), 112  }
  0x14   : > { %449 = vperm.xlu1 (!%p291_p9), %1479, %v367_v0   ;;  %v1604_v17 = vmov (!%p291_p9), 17   ;;  %vm2378_vm6 = vcmask (!%p291_p9), 7168   ;;  %vm2377_vm8 = vcmask (!%p291_p9), 1039360   ;;  %vm2376_vm9 = vcmask (!%p291_p9), 924672   ;;  %s1613_s21 = smov (!%p291_p9), 33   ;;  %s1614_s22 = smov (!%p291_p9), 32  }
  0x15   : > { %s327_s16 = scalar_select %p326_p10, %s1703_s13, 1  ;;  %vm2374_vm10 = vcmask 916480   ;;  %vm2375_vm11 = vcmask 908288   ;;  %vm691_vm12 = vcmask 269312   ;;  %vm667_vm13 = vcmask 277504  }
  0x17   : > { %1481 = vset.pattern.permute.xlu0 %v1585_v6  ;;  %s1387_s17 = sshll.u32 %s327_s16, 3  ;;  %s2368_s16 = smov 111  }
  0x18   : > { %397 = vperm.xlu0 %1481, %v367_v0   ;;  %1480 = vset.pattern.permute.xlu1 %v1582_v1  ;;  %s330_s23 = scalar_lea.vmem %s2358_s0, %s1387_s17  ;;  %s1612_s17 = smov 34  }
  0x19   : > { %477 = vperm.xlu1 %1480, %v474_v5   ;;  %v331_v22 = vld [vmem:[%s330_s23] sm:$0xff]  ;;  %v1600_v5 = vmov 12   ;;  %s1616_s23 = smov 31  }
  0x1a   : > { %v377_v28 = vrot.slane %v331_v22, %v376_v18  ;;  %v381_v29 = vrot.slane %v331_v22, %v380_v19  ;;  %v403_v30 = vrot.slane %v331_v22, %v402_v20  ;;  %v407_v31 = vrot.slane %v331_v22, %v406_v21 }
  0x1b   : > { %v429_v33 = vrot.slane %v331_v22, %v428_v23  ;;  %v433_v34 = vrot.slane %v331_v22, %v432_v24  ;;  %v455_v36 = vrot.slane %v331_v22, %v454_v26  ;;  %v459_v37 = vrot.slane %v331_v22, %v458_v27 }
  0x1c   : > { %519 = vperm.xlu0 %1481, %v482_v3   ;;  %v387_v38 = vrot.slane %v377_v28, %v376_v18  ;;  %v391_v39 = vrot.slane %v381_v29, %v376_v18  ;;  %v413_v40 = vrot.slane %v403_v30, %v402_v20  ;;  %v417_v41 = vrot.slane %v407_v31, %v402_v20 }
  0x1d   : > { %1482 = vset.pattern.permute.xlu1 %v1586_v8  ;;  %v439_v42 = vrot.slane %v429_v33, %v428_v23  ;;  %v443_v43 = vrot.slane %v433_v34, %v428_v23  ;;  %v465_v44 = vrot.slane %v455_v36, %v454_v26  ;;  %v469_v45 = vrot.slane %v459_v37, %v454_v26 }
  0x1e   : > { %569 = vperm.xlu1 %1482, %v482_v3   ;;  %v1605_v18 = vmov 16   ;;  %v1606_v19 = vmov 18   ;;  %v1607_v20 = vmov 19   ;;  %v1609_v21 = vmov 20  }
  0x20   : > { %699 = vperm.xlu0 %1481, %v1747_v7  }
  0x22   : > { %1483 = vset.pattern.permute.xlu1 %v1587_v9 }
  0x23   : > { %588 = vperm.xlu1 %1483, %v482_v3  }
  0x24   : > { %1485 = vset.pattern.permute.xlu0 %v1583_v2 }
  0x25   : > { %542 = vperm.xlu0 %1485, %v482_v3  }
  0x27   : > { %1484 = vset.pattern.permute.xlu1 %v1582_v1 }
  0x28   : > { %653 = vperm.xlu1 %1484, %v650_v10   ;;  %v1601_v10 = vmov 13  }
  0x29   : > { %716 = vperm.xlu0 %1485, %v1747_v7  }
  0x2c   : > { %680 = vperm.xlu1 %1484, %v1747_v7  }
  0x2d   : > { %1486 = vset.pattern.permute.xlu0 %v1584_v4 }
  0x2e   : > { %561 = vperm.xlu0 %1486, %v482_v3  }
  0x30   : > { %1494 = vset.pattern.permute.xlu1 %v1588_v11  ;;  %v1602_v11 = vmov 14  }
  0x32   : > { %735 = vperm.xlu0 %1486, %v1747_v7  }
  0x36   : > { %1487 = vset.pattern.permute.xlu0 %v1586_v8 }
  0x37   : > { %758 = vperm.xlu0 %1487, %v1747_v7  }
  0x3b   : > { %1488 = vset.pattern.permute.xlu0 %v1587_v9 }
  0x3c   : > { %777 = vperm.xlu0 %1488, %v1747_v7  }
  0x40   : > { %1489 = vset.pattern.permute.xlu0 %v1589_v12 }
  0x41   : > { %607 = vperm.xlu0 %1489, %v482_v3  }
  0x45   : > { %795 = vperm.xlu0 %1489, %v1747_v7  }
  0x49   : > { %1490 = vset.pattern.permute.xlu0 %v1590_v13 }
  0x4a   : > { %624 = vperm.xlu0 %1490, %v482_v3  }
  0x4e   : > { %811 = vperm.xlu0 %1490, %v1747_v7  }
  0x52   : > { %1491 = vset.pattern.permute.xlu0 %v1591_v14 }
  0x53   : > { %643 = vperm.xlu0 %1491, %v482_v3   ;;  %v1598_v3 = vmov 10  }
  0x57   : > { %829 = vperm.xlu0 %1491, %v1747_v7  }
  0x5b   : > { %1492 = vset.pattern.permute.xlu0 %v1592_v15  ;;  %v1603_v15 = vmov 15  }
  0x8e   : > { %v371_v25 = vpop.permute.xlu0 %370  ;;  %v424_v32 = vpop.permute.xlu1 %423 }
  0x8f   : > { %v392_v48 = vmul.f32 %v387_v38, %v371_v25  ;;  %v393_v49 = vmul.f32 %v391_v39, %v371_v25  ;;  %v444_v52 = vmul.f32 %v439_v42, %v424_v32  ;;  %v445_v53 = vmul.f32 %v443_v43, %v424_v32 }
  0x92   : > { %v1777_v35 = vpop.permute.xlu0 %502 }
  0x93   : > { %v450_v47 = vpop.permute.xlu1 %449 }
  0x94   : > { %v470_v56 = vmul.f32 %v465_v44, %v450_v47  ;;  %v471_v57 = vmul.f32 %v469_v45, %v450_v47 }
  0x97   : > { %v398_v46 = vpop.permute.xlu0 %397 }
  0x98   : > { %v418_v50 = vmul.f32 %v413_v40, %v398_v46  ;;  %v419_v51 = vmul.f32 %v417_v41, %v398_v46  ;;  %v478_v62 = vpop.permute.xlu1 %477 }
  0x9a   : > { %v420_v54 = vadd.f32 %v418_v50, %v392_v48  ;;  %v421_v55 = vadd.f32 %v419_v51, %v393_v49  ;;  %v333_v49 = vand.u32 127, %v332_v16 }
  0x9b   : > { %v520_v22 = vpop.permute.xlu0 %519 }
  0x9c   : > { %v446_v58 = vadd.f32 %v444_v52, %v420_v54  ;;  %v447_v59 = vadd.f32 %v445_v53, %v421_v55  ;;  %v334_v52 = vadd.s32 128, %v333_v49  ;;  %v1869_v55 = vand.u32 15, %v333_v49 }
  0x9d   : > { %v1828_v23 = vpop.permute.xlu1 %569 }
  0x9e   : > { %v472_v60 = vadd.f32 %v470_v56, %v446_v58  ;;  %v473_v61 = vadd.f32 %v471_v57, %v447_v59  ;;  %v1865_v53 = vand.u32 15, %v334_v52  ;;  %vm361_vm4 = vcmp.ge.s32.totalorder %v1869_v55, 1 }
  0x9f   : > { %v1830_v24 = vpop.permute.xlu0 %699  ;;  %vm363_vm7 = vcmp.lt.s32.totalorder %v1869_v55, 15  ;;  %vm359_vm14 = vcmp.ge.s32.totalorder %v1869_v55, 2 }
  0xa0   : > { %v1779_v63 = vadd.f32 %v478_v62, %v472_v60  ;;  %v1781_v0 = vadd.f32 %v478_v62, %v473_v61  ;;  %vm362_vm2 = vcmp.ge.s32.totalorder %v1865_v53, 1  ;;  %vm364_vm5 = vcmp.lt.s32.totalorder %v1865_v53, 15 }
  0xa1   : > { %vm360_vm15 = vcmp.ge.s32.totalorder %v1865_v53, 2 }
  0xa2   : > { %487 = vrot.lane.b32.xlu1 %v1781_v0, %s1593_s24  ;;  %485 = vrot.lane.b32.xlu0 %v1779_v63, %s1593_s24  ;;  %v1832_v25 = vpop.permute.xlu1 %588 }
  0xa4   : > { %v543_v26 = vpop.permute.xlu0 %542 }
  0xa6   : > { %509 = vrot.lane.b32.xlu1 %v1779_v63, %s1594_s25  ;;  %578 = vrot.lane.b32.xlu0 %v1781_v0, %s1595_s26 }
  0xa7   : > { %v1834_v27 = vpop.permute.xlu1 %653 }
  0xa8   : > { %v1836_v28 = vpop.permute.xlu0 %716 }
  0xaa   : > { %511 = vrot.lane.b32.xlu1 %v1781_v0, %s1594_s25  ;;  %595 = vrot.lane.b32.xlu0 %v1779_v63, %s2372_s27 }
  0xab   : > { %v1838_v29 = vpop.permute.xlu1 %680 }
  0xad   : > { %v1840_v30 = vpop.permute.xlu0 %561 }
  0xae   : > { %526 = vrot.lane.b32.xlu1 %v1779_v63, %s1597_s28  ;;  %848 = vperm.xlu0 %1492, %v1747_v7  }
  0xb1   : > { %v1842_v32 = vpop.permute.xlu0 %735 }
  0xb2   : > { %528 = vrot.lane.b32.xlu1 %v1781_v0, %s1597_s28  ;;  %1493 = vset.pattern.permute.xlu0 %v1598_v3 }
  0xb3   : > { %867 = vperm.xlu0 %1493, %v1747_v7  }
  0xb6   : > { %549 = vrot.lane.b32.xlu1 %v1779_v63, %s1599_s29  ;;  %v1844_v34 = vpop.permute.xlu0 %758 }
  0xb7   : > { %1495 = vset.pattern.permute.xlu0 %v1600_v5 }
  0xb8   : > { %893 = vperm.xlu0 %1495, %v1747_v7  }
  0xba   : > { %551 = vrot.lane.b32.xlu1 %v1781_v0, %s1599_s29 }
  0xbb   : > { %v1846_v37 = vpop.permute.xlu0 %777 }
  0xbc   : > { %1497 = vset.pattern.permute.xlu0 %v1602_v11 }
  0xbd   : > { %930 = vperm.xlu0 %1497, %v1747_v7  }
  0xbe   : > { %576 = vrot.lane.b32.xlu1 %v1779_v63, %s1595_s26 }
  0xc0   : > { %v1848_v39 = vpop.permute.xlu0 %607 }
  0xc1   : > { %1500 = vset.pattern.permute.xlu0 %v1604_v17 }
  0xc2   : > { %885 = vperm.xlu1 %1494, %v1747_v7   ;;  %983 = vperm.xlu0 %1500, %v1747_v7  }
  0xc4   : > { %v1850_v41 = vpop.permute.xlu0 %795 }
  0xc6   : > { %1496 = vset.pattern.permute.xlu1 %v1601_v10  ;;  %1501 = vset.pattern.permute.xlu0 %v1606_v19 }
  0xc7   : > { %911 = vperm.xlu1 %1496, %v1747_v7   ;;  %1001 = vperm.xlu0 %1501, %v1747_v7  }
  0xc9   : > { %v1852_v43 = vpop.permute.xlu0 %624 }
  0xcb   : > { %1498 = vset.pattern.permute.xlu1 %v1603_v15  ;;  %1502 = vset.pattern.permute.xlu0 %v1607_v20 }
  0xcc   : > { %949 = vperm.xlu1 %1498, %v1747_v7   ;;  %1020 = vperm.xlu0 %1502, %v1747_v7  }
  0xcd   : > { %v1854_v45 = vpop.permute.xlu0 %811 }
  0xd0   : > { %1499 = vset.pattern.permute.xlu1 %v1605_v18  ;;  %1503 = vset.pattern.permute.xlu0 %v1609_v21 }
  0xd1   : > { %967 = vperm.xlu1 %1499, %v1747_v7   ;;  %1039 = vperm.xlu0 %1503, %v1747_v7  }
  0xd2   : > { %v1856_v47 = vpop.permute.xlu0 %643 }
  0xd5   : > { %597 = vrot.lane.b32.xlu1 %v1781_v0, %s2372_s27  ;;  %s1623_s27 = smov 14  }
  0xd6   : > { %1509 = vset.pattern.permute.xlu1 %v1585_v6  ;;  %v1611_v6 = vmov 21   ;;  %v1861_v50 = vpop.permute.xlu0 %829 }
  0xd7   : > { %1504 = vset.pattern.permute.xlu0 %v1611_v6 }
  0xd9   : > { %614 = vrot.lane.b32.xlu1 %v1779_v63, %s2370_s14 }
  0xdd   : > { %616 = vrot.lane.b32.xlu1 %v1781_v0, %s2370_s14  ;;  %s1624_s14 = smov 2  }
  0xe1   : > { %631 = vrot.lane.b32.xlu1 %v1779_v63, %s2368_s16 }
  0xe5   : > { %633 = vrot.lane.b32.xlu1 %v1781_v0, %s2368_s16  ;;  %s1622_s16 = smov 95  }
 0x114   : > { %v488_v31 = vpop.permute.xlu1 %487  ;;  %v486_v56 = vpop.permute.xlu0 %485 }
 0x115   : > { %v490_v57 = vsel %vm489_vm0, %v486_v56, %v488_v31  ;;  %v493_v60 = vsel %vm489_vm0, 0.0, %v486_v56 }
 0x116   : > { %v499_v3 = vsel %vm362_vm2, %v490_v57, 0.0  ;;  %v498_v17 = vsel %vm361_vm4, %v493_v60, 0.0 }
 0x117   : > { %v506_v6 = vmul.f32 %v1777_v35, %v499_v3 }
 0x118   : > { %v510_v33 = vpop.permute.xlu1 %509  ;;  %v579_v18 = vpop.permute.xlu0 %578 }
 0x119   : > { %v517_v5 = vsel %vm2379_vm3, 0.0, %v510_v33 }
 0x11a   : > { %v522_v31 = vmul.f32 %v520_v22, %v517_v5  ;;  %v573_v5 = vmul.f32 %v1828_v23, %v1781_v0 }
 0x11c   : > { %v512_v36 = vpop.permute.xlu1 %511 }
 0x11d   : > { %v514_v58 = vsel %vm2379_vm3, %v510_v33, %v512_v36 }
 0x11e   : > { %v523_v11 = vmul.f32 %v520_v22, %v514_v58  ;;  %v584_v22 = vsel %vm2377_vm8, %v579_v18, 0.0  ;;  %v596_v58 = vpop.permute.xlu0 %595 }
 0x120   : > { %v527_v38 = vpop.permute.xlu1 %526 }
 0x121   : > { %v534_v61 = vsel %vm530_vm1, 0.0, %v527_v38 }
 0x122   : > { %v539_v19 = vsel %vm363_vm7, %v534_v61, 0.0 }
 0x124   : > { %v529_v40 = vpop.permute.xlu1 %528 }
 0x125   : > { %v531_v16 = vsel %vm530_vm1, %v527_v38, %v529_v40  ;;  %v505_v38 = vmul.f32 %v1777_v35, %v498_v17  ;;  %v525_v40 = vadd.f32 %v523_v11, %v506_v6 }
 0x126   : > { %v540_v10 = vsel %vm364_vm5, %v531_v16, 0.0 }
 0x127   : > { %v546_v33 = vmul.f32 %v543_v26, %v540_v10  ;;  %v524_v52 = vadd.f32 %v522_v31, %v505_v38 }
 0x128   : > { %v550_v42 = vpop.permute.xlu1 %549 }
 0x129   : > { %v557_v15 = vsel %vm2378_vm6, 0.0, %v550_v42  ;;  %v548_v56 = vadd.f32 %v546_v33, %v525_v40 }
 0x12a   : > { %v558_v36 = vsel %vm361_vm4, %v557_v15, 0.0  ;;  %v572_v15 = vmul.f32 %v1828_v23, %v1779_v63 }
 0x12b   : > { %v564_v57 = vmul.f32 %v1840_v30, %v558_v36 }
 0x12c   : > { %v552_v44 = vpop.permute.xlu1 %551 }
 0x12d   : > { %v554_v62 = vsel %vm2378_vm6, %v550_v42, %v552_v44  ;;  %v545_v42 = vmul.f32 %v543_v26, %v539_v19 }
 0x12e   : > { %v559_v20 = vsel %vm362_vm2, %v554_v62, 0.0 }
 0x12f   : > { %v565_v44 = vmul.f32 %v1840_v30, %v559_v20  ;;  %v547_v60 = vadd.f32 %v545_v42, %v524_v52  ;;  %v586_v30 = vsel %vm364_vm5, %v584_v22, 0.0 }
 0x130   : > { %v577_v46 = vpop.permute.xlu1 %576  ;;  %v592_v6 = vmul.f32 %v1832_v25, %v586_v30 }
 0x131   : > { %v581_v16 = vsel %vm2377_vm8, %v577_v46, %v579_v18  ;;  %v567_v61 = vadd.f32 %v565_v44, %v548_v56  ;;  %v566_v10 = vadd.f32 %v564_v57, %v547_v60  ;;  %vm365_vm8 = vcmp.lt.s32.totalorder %v1869_v55, 14 }
 0x132   : > { %v585_v26 = vsel %vm363_vm7, %v581_v16, 0.0 }
 0x133   : > { %v575_v17 = vadd.f32 %v573_v5, %v567_v61  ;;  %v591_v18 = vmul.f32 %v1832_v25, %v585_v26  ;;  %v574_v31 = vadd.f32 %v572_v15, %v566_v10 }
 0x135   : > { %v593_v38 = vadd.f32 %v591_v18, %v574_v31  ;;  %v594_v40 = vadd.f32 %v592_v6, %v575_v17 }
 0x141   : > { %v1858_v48 = vpop.permute.xlu1 %885 }
 0x146   : > { %v1863_v51 = vpop.permute.xlu1 %911 }
 0x14b   : > { %v1867_v54 = vpop.permute.xlu1 %949 }
 0x150   : > { %v1877_v59 = vpop.permute.xlu1 %967 }
 0x154   : > { %v598_v21 = vpop.permute.xlu1 %597 }
 0x155   : > { %v600_v62 = vsel %vm2376_vm9, %v596_v58, %v598_v21  ;;  %v603_v35 = vsel %vm2376_vm9, %v598_v21, 0.0  ;;  %vm366_vm9 = vcmp.lt.s32.totalorder %v1865_v53, 14 }
 0x156   : > { %v604_v46 = vsel %vm361_vm4, %v600_v62, 0.0  ;;  %v605_v11 = vsel %vm362_vm2, %v603_v35, 0.0 }
 0x157   : > { %v610_v33 = vmul.f32 %v1848_v39, %v604_v46  ;;  %v611_v36 = vmul.f32 %v1848_v39, %v605_v11 }
 0x158   : > { %v615_v49 = vpop.permute.xlu1 %614 }
 0x159   : > { %v612_v52 = vadd.f32 %v610_v33, %v593_v38 }
 0x15c   : > { %v617_v3 = vpop.permute.xlu1 %616 }
 0x15d   : > { %v619_v19 = vsel %vm2374_vm10, %v615_v49, %v617_v3  ;;  %v622_v20 = vsel %vm2374_vm10, %v617_v3, 0.0  ;;  %v613_v49 = vadd.f32 %v611_v36, %v594_v40  ;;  %vm727_vm10 = vcmask 252928  }
 0x15e   : > { %v627_v23 = vmul.f32 %v1852_v43, %v619_v19  ;;  %v628_v42 = vmul.f32 %v1852_v43, %v622_v20 }
 0x160   : > { %v632_v21 = vpop.permute.xlu1 %631  ;;  %v629_v16 = vadd.f32 %v627_v23, %v612_v52  ;;  %v630_v22 = vadd.f32 %v628_v42, %v613_v49 }
 0x164   : > { %v634_v44 = vpop.permute.xlu1 %633 }
 0x165   : > { %v636_v56 = vsel %vm2375_vm11, %v632_v21, %v634_v44  ;;  %v639_v57 = vsel %vm2375_vm11, %v634_v44, 0.0  ;;  %vm710_vm11 = vcmask 261120  }
 0x166   : > { %v640_v25 = vsel %vm363_vm7, %v636_v56, 0.0  ;;  %v641_v39 = vsel %vm364_vm5, %v639_v57, 0.0 }
 0x167   : > { %v646_v58 = vmul.f32 %v1856_v47, %v640_v25  ;;  %v647_v60 = vmul.f32 %v1856_v47, %v641_v39  ;;  %v1120_v47 = vld [vmem:[%s2364_s6] sm:$0xf] }
 0x169   : > { %v648_v43 = vadd.f32 %v646_v58, %v629_v16  ;;  %v649_v61 = vadd.f32 %v647_v60, %v630_v22 }
 0x16b   : > { %v656_v62 = vadd.f32 %v1834_v27, %v648_v43  ;;  %v657_v35 = vadd.f32 %v1834_v27, %v649_v61  ;;  %v1620_v27 = vmov 24  }
 0x16d   : > { %v1936_v26 = vmax.f32 %v1779_v63, %v656_v62  ;;  %v1939_v3 = vmax.f32 %v1781_v0, %v657_v35  ;;  %v1615_v63 = vmov 22   ;;  %v1617_v0 = vmov 23  }
 0x16f   : > { %665 = vrot.lane.b32.xlu0 %v1939_v3, %s1612_s17  ;;  %663 = vrot.lane.b32.xlu1 %v1936_v26, %s1612_s17  ;;  %s1618_s17 = smov 126  }
 0x173   : > { %687 = vrot.lane.b32.xlu0 %v1936_v26, %s1613_s21  ;;  %689 = vrot.lane.b32.xlu1 %v1939_v3, %s1613_s21  ;;  %s1619_s21 = smov 30  }
 0x177   : > { %1058 = vperm.xlu0 %1504, %v1747_v7   ;;  %706 = vrot.lane.b32.xlu1 %v1936_v26, %s1614_s22 }
 0x17b   : > { %1505 = vset.pattern.permute.xlu0 %v1615_v63  ;;  %708 = vrot.lane.b32.xlu1 %v1939_v3, %s1614_s22  ;;  %s1621_s22 = smov 18  }
 0x17c   : > { %1075 = vperm.xlu0 %1505, %v1747_v7  }
 0x17f   : > { %723 = vrot.lane.b32.xlu1 %v1936_v26, %s1616_s23 }
 0x180   : > { %902 = vrot.lane.b32.xlu0 %v1939_v3, %s1595_s26 }
 0x181   : > { %1506 = vset.pattern.permute.xlu0 %v1617_v0 }
 0x183   : > { %725 = vrot.lane.b32.xlu1 %v1939_v3, %s1616_s23  ;;  %s2382_s23 = smov 113  }
 0x184   : > { %918 = vrot.lane.b32.xlu0 %v1936_v26, %s1618_s17 }
 0x187   : > { %742 = vrot.lane.b32.xlu1 %v1936_v26, %s1619_s21 }
 0x188   : > { %1094 = vperm.xlu0 %1506, %v1747_v7  }
 0x18b   : > { %744 = vrot.lane.b32.xlu1 %v1939_v3, %s1619_s21  ;;  %s2384_s21 = smov 111  }
 0x18c   : > { %1507 = vset.pattern.permute.xlu0 %v1620_v27 }
 0x18d   : > { %1113 = vperm.xlu0 %1507, %v1747_v7   ;;  %v1973_v7 = vld [vmem:[%s2365_s7] sm:$0xf] }
 0x18f   : > { %765 = vrot.lane.b32.xlu1 %v1936_v26, %s1621_s22 }
 0x191   : > { %1082 = vrot.lane.b32.xlu0 %v1936_v26, %s1622_s16 }
 0x192   : > { %1508 = vset.pattern.permute.xlu0 %v1582_v1 }
 0x193   : > { %767 = vrot.lane.b32.xlu1 %v1939_v3, %s1621_s22  ;;  %s1625_s22 = smov 114  }
 0x195   : > { %1123 = vperm.xlu0 %1508, %v1120_v47  }
 0x197   : > { %784 = vrot.lane.b32.xlu1 %v1936_v26, %s1593_s24 }
 0x199   : > { %1510 = vset.pattern.permute.xlu0 %v1583_v2 }
 0x19a   : > { %1177 = vperm.xlu0 %1510, %v1973_v7  }
 0x19b   : > { %786 = vrot.lane.b32.xlu1 %v1939_v3, %s1593_s24 }
 0x19e   : > { %1513 = vset.pattern.permute.xlu0 %v1587_v9 }
 0x19f   : > { %802 = vrot.lane.b32.xlu1 %v1936_v26, %s1594_s25  ;;  %1221 = vperm.xlu0 %1513, %v1973_v7  }
 0x1a3   : > { %804 = vrot.lane.b32.xlu1 %v1939_v3, %s1594_s25  ;;  %1514 = vset.pattern.permute.xlu0 %v1589_v12 }
 0x1a4   : > { %1239 = vperm.xlu0 %1514, %v1973_v7  }
 0x1a7   : > { %818 = vrot.lane.b32.xlu1 %v1936_v26, %s1597_s28 }
 0x1a8   : > { %1515 = vset.pattern.permute.xlu0 %v1582_v1  ;;  %v2000_v1 = vpop.permute.xlu0 %848 }
 0x1a9   : > { %1143 = vperm.xlu0 %1515, %v1973_v7  }
 0x1ab   : > { %820 = vrot.lane.b32.xlu1 %v1939_v3, %s1597_s28 }
 0x1ac   : > { %v2006_v2 = vpop.permute.xlu0 %867 }
 0x1af   : > { %836 = vrot.lane.b32.xlu1 %v1936_v26, %s1623_s27 }
 0x1b0   : > { %v2009_v9 = vpop.permute.xlu0 %893 }
 0x1b3   : > { %838 = vrot.lane.b32.xlu1 %v1939_v3, %s1623_s27  ;;  %s1626_s27 = smov 110  }
 0x1b4   : > { %v2012_v12 = vpop.permute.xlu0 %930 }
 0x1b7   : > { %855 = vrot.lane.b32.xlu1 %v1936_v26, %s1624_s14 }
 0x1b8   : > { %v2018_v5 = vpop.permute.xlu0 %983 }
 0x1bb   : > { %857 = vrot.lane.b32.xlu1 %v1939_v3, %s1624_s14  ;;  %s1627_s14 = smov 98  }
 0x1bc   : > { %v2022_v30 = vpop.permute.xlu0 %1001 }
 0x1bf   : > { %874 = vrot.lane.b32.xlu1 %v1936_v26, %s1599_s29 }
 0x1c0   : > { %v2028_v11 = vpop.permute.xlu0 %1020 }
 0x1c3   : > { %876 = vrot.lane.b32.xlu1 %v1939_v3, %s1599_s29 }
 0x1c4   : > { %v2032_v18 = vpop.permute.xlu0 %1039 }
 0x1c7   : > { %900 = vrot.lane.b32.xlu1 %v1936_v26, %s1595_s26 }
 0x1cb   : > { %920 = vrot.lane.b32.xlu1 %v1939_v3, %s1618_s17  ;;  %s2383_s17 = smov 112  }
 0x1cf   : > { %937 = vrot.lane.b32.xlu1 %v1936_v26, %s1625_s22 }
 0x1d3   : > { %939 = vrot.lane.b32.xlu1 %v1939_v3, %s1625_s22  ;;  %s1628_s22 = smov 97  }
 0x1d7   : > { %956 = vrot.lane.b32.xlu1 %v1936_v26, %s2382_s23 }
 0x1db   : > { %958 = vrot.lane.b32.xlu1 %v1939_v3, %s2382_s23 }
 0x1df   : > { %974 = vrot.lane.b32.xlu1 %v1936_v26, %s2383_s17 }
 0x1e1   : > { %v664_v10 = vpop.permute.xlu1 %663  ;;  %v666_v20 = vpop.permute.xlu0 %665 }
 0x1e2   : > { %v671_v40 = vsel %vm667_vm13, 0.0, %v664_v10  ;;  %v668_v23 = vsel %vm667_vm13, %v664_v10, %v666_v20  ;;  %vm769_vm13 = vcmask 146432  }
 0x1e3   : > { %976 = vrot.lane.b32.xlu1 %v1939_v3, %s2383_s17  ;;  %v676_v49 = vsel %vm359_vm14, %v671_v40, 0.0  ;;  %v677_v57 = vsel %vm360_vm15, %v668_v23, 0.0 }
 0x1e4   : > { %v683_v43 = vmul.f32 %v1838_v29, %v676_v49  ;;  %v684_v63 = vmul.f32 %v1838_v29, %v677_v57 }
 0x1e5   : > { %v690_v46 = vpop.permute.xlu1 %689  ;;  %v688_v31 = vpop.permute.xlu0 %687 }
 0x1e6   : > { %v695_v33 = vsel %vm691_vm12, 0.0, %v688_v31  ;;  %v692_v38 = vsel %vm691_vm12, %v688_v31, %v690_v46  ;;  %vm746_vm12 = vcmask 244736  }
 0x1e7   : > { %990 = vrot.lane.b32.xlu1 %v1936_v26, %s2384_s21  ;;  %v696_v42 = vsel %vm361_vm4, %v695_v33, 0.0  ;;  %v697_v44 = vsel %vm362_vm2, %v692_v38, 0.0 }
 0x1e8   : > { %v702_v25 = vmul.f32 %v1830_v24, %v696_v42  ;;  %v703_v22 = vmul.f32 %v1830_v24, %v697_v44 }
 0x1e9   : > { %v707_v15 = vpop.permute.xlu1 %706 }
 0x1ea   : > { %v714_v58 = vsel %vm710_vm11, 0.0, %v707_v15  ;;  %v704_v47 = vadd.f32 %v702_v25, %v683_v43 }
 0x1eb   : > { %992 = vrot.lane.b32.xlu1 %v1939_v3, %s2384_s21  ;;  %v719_v10 = vmul.f32 %v1836_v28, %v714_v58 }
 0x1ed   : > { %v709_v17 = vpop.permute.xlu1 %708  ;;  %v721_v38 = vadd.f32 %v719_v10, %v704_v47 }
 0x1ee   : > { %v711_v39 = vsel %vm710_vm11, %v707_v15, %v709_v17  ;;  %v705_v17 = vadd.f32 %v703_v22, %v684_v63  ;;  %vm859_vm11 = vcmask 15360  }
 0x1ef   : > { %1008 = vrot.lane.b32.xlu1 %v1936_v26, %s1626_s27  ;;  %v720_v0 = vmul.f32 %v1836_v28, %v711_v39 }
 0x1f1   : > { %v724_v19 = vpop.permute.xlu1 %723  ;;  %v722_v28 = vadd.f32 %v720_v0, %v705_v17 }
 0x1f2   : > { %v731_v16 = vsel %vm727_vm10, 0.0, %v724_v19 }
 0x1f3   : > { %1010 = vrot.lane.b32.xlu1 %v1939_v3, %s1626_s27  ;;  %v732_v27 = vsel %vm363_vm7, %v731_v16, 0.0  ;;  %s1629_s27 = smov 96  }
 0x1f4   : > { %v738_v20 = vmul.f32 %v1842_v32, %v732_v27 }
 0x1f5   : > { %v726_v21 = vpop.permute.xlu1 %725 }
 0x1f6   : > { %v728_v56 = vsel %vm727_vm10, %v724_v19, %v726_v21  ;;  %v740_v44 = vadd.f32 %v738_v20, %v721_v38  ;;  %vm840_vm10 = vcmask 113664  }
 0x1f7   : > { %1027 = vrot.lane.b32.xlu1 %v1936_v26, %s1627_s14  ;;  %v733_v61 = vsel %vm364_vm5, %v728_v56, 0.0 }
 0x1f8   : > { %v739_v19 = vmul.f32 %v1842_v32, %v733_v61 }
 0x1f9   : > { %v743_v6 = vpop.permute.xlu1 %742 }
 0x1fa   : > { %v750_v62 = vsel %vm746_vm12, 0.0, %v743_v6  ;;  %v741_v23 = vadd.f32 %v739_v19, %v722_v28 }
 0x1fb   : > { %1029 = vrot.lane.b32.xlu1 %v1939_v3, %s1627_s14  ;;  %v755_v29 = vsel %vm365_vm8, %v750_v62, 0.0  ;;  %s1630_s14 = smov 94  }
 0x1fc   : > { %v761_v40 = vmul.f32 %v1844_v34, %v755_v29 }
 0x1fd   : > { %v745_v36 = vpop.permute.xlu1 %744 }
 0x1fe   : > { %v747_v60 = vsel %vm746_vm12, %v743_v6, %v745_v36  ;;  %v763_v25 = vadd.f32 %v761_v40, %v740_v44  ;;  %vm2385_vm12 = vcmask 1039360  }
 0x1ff   : > { %1046 = vrot.lane.b32.xlu1 %v1936_v26, %s1628_s22  ;;  %v756_v46 = vsel %vm366_vm9, %v747_v60, 0.0 }
 0x200   : > { %v762_v31 = vmul.f32 %v1844_v34, %v756_v46 }
 0x201   : > { %v766_v52 = vpop.permute.xlu1 %765 }
 0x202   : > { %v773_v15 = vsel %vm769_vm13, 0.0, %v766_v52  ;;  %v764_v56 = vadd.f32 %v762_v31, %v741_v23 }
 0x203   : > { %1048 = vrot.lane.b32.xlu1 %v1939_v3, %s1628_s22  ;;  %v774_v33 = vsel %vm359_vm14, %v773_v15, 0.0 }
 0x205   : > { %v768_v35 = vpop.permute.xlu1 %767 }
 0x206   : > { %v770_v24 = vsel %vm769_vm13, %v766_v52, %v768_v35  ;;  %v780_v52 = vmul.f32 %v1846_v37, %v774_v33  ;;  %vm922_vm13 = vcmask 1031168  }
 0x207   : > { %1065 = vrot.lane.b32.xlu1 %v1936_v26, %s1629_s27  ;;  %v775_v21 = vsel %vm360_vm15, %v770_v24, 0.0 }
 0x208   : > { %v781_v32 = vmul.f32 %v1846_v37, %v775_v21  ;;  %v782_v58 = vadd.f32 %v780_v52, %v763_v25 }
 0x209   : > { %v785_v6 = vpop.permute.xlu1 %784 }
 0x20a   : > { %v791_v36 = vsel %vm489_vm0, 0.0, %v785_v6  ;;  %v783_v16 = vadd.f32 %v781_v32, %v764_v56 }
 0x20b   : > { %1067 = vrot.lane.b32.xlu1 %v1939_v3, %s1629_s27  ;;  %v792_v42 = vsel %vm361_vm4, %v791_v36, 0.0 }
 0x20c   : > { %v798_v39 = vmul.f32 %v1850_v41, %v792_v42 }
 0x20d   : > { %v787_v49 = vpop.permute.xlu1 %786 }
 0x20e   : > { %v788_v57 = vsel %vm489_vm0, %v785_v6, %v787_v49  ;;  %v800_v61 = vadd.f32 %v798_v39, %v782_v58 }
 0x20f   : > { %v793_v34 = vsel %vm362_vm2, %v788_v57, 0.0  ;;  %1084 = vrot.lane.b32.xlu1 %v1939_v3, %s1622_s16 }
 0x210   : > { %v799_v22 = vmul.f32 %v1850_v41, %v793_v34 }
 0x211   : > { %v803_v60 = vpop.permute.xlu1 %802 }
 0x212   : > { %v801_v43 = vadd.f32 %v799_v22, %v783_v16  ;;  %v809_v37 = vsel %vm2379_vm3, 0.0, %v803_v60 }
 0x213   : > { %v814_v62 = vmul.f32 %v1854_v45, %v809_v37  ;;  %1101 = vrot.lane.b32.xlu1 %v1936_v26, %s1630_s14 }
 0x215   : > { %v816_v35 = vadd.f32 %v814_v62, %v800_v61  ;;  %v805_v63 = vpop.permute.xlu1 %804 }
 0x216   : > { %v806_v0 = vsel %vm2379_vm3, %v803_v60, %v805_v63  ;;  %vm1031_vm3 = vcmask 801792  }
 0x217   : > { %v815_v27 = vmul.f32 %v1854_v45, %v806_v0  ;;  %1103 = vrot.lane.b32.xlu1 %v1939_v3, %s1630_s14  ;;  %s1631_s14 = smov [#allocation2]  }
 0x219   : > { %v817_v41 = vadd.f32 %v815_v27, %v801_v43  ;;  %v819_v24 = vpop.permute.xlu1 %818 }
 0x21a   : > { %v825_v47 = vsel %vm530_vm1, 0.0, %v819_v24 }
 0x21b   : > { %v826_v10 = vsel %vm363_vm7, %v825_v47, 0.0  ;;  %1159 = vperm.xlu1 %1509, %v1973_v7  }
 0x21c   : > { %v832_v46 = vmul.f32 %v1861_v50, %v826_v10 }
 0x21d   : > { %v821_v15 = vpop.permute.xlu1 %820 }
 0x21e   : > { %v834_v17 = vadd.f32 %v832_v46, %v816_v35  ;;  %v822_v19 = vsel %vm530_vm1, %v819_v24, %v821_v15 }
 0x21f   : > { %v827_v45 = vsel %vm364_vm5, %v822_v19, 0.0  ;;  %1511 = vset.pattern.permute.xlu1 %v1584_v4 }
 0x220   : > { %v833_v29 = vmul.f32 %v1861_v50, %v827_v45  ;;  %1195 = vperm.xlu1 %1511, %v1973_v7  }
 0x221   : > { %v837_v20 = vpop.permute.xlu1 %836 }
 0x222   : > { %v835_v21 = vadd.f32 %v833_v29, %v817_v41  ;;  %v844_v6 = vsel %vm840_vm10, 0.0, %v837_v20 }
 0x223   : > { %v845_v28 = vsel %vm365_vm8, %v844_v6, 0.0 }
 0x224   : > { %v851_v31 = vmul.f32 %v2000_v1, %v845_v28  ;;  %1512 = vset.pattern.permute.xlu1 %v1586_v8 }
 0x225   : > { %1203 = vperm.xlu1 %1512, %v1973_v7   ;;  %v839_v33 = vpop.permute.xlu1 %838 }
 0x226   : > { %v853_v36 = vadd.f32 %v851_v31, %v834_v17  ;;  %v841_v4 = vsel %vm840_vm10, %v837_v20, %v839_v33  ;;  %vm2386_vm10 = vmmov %vm2385_vm12  ;;  %v897_v31 = vmul.f32 %v2009_v9, %v1939_v3  ;;  %v896_v33 = vmul.f32 %v2009_v9, %v1936_v26 }
 0x227   : > { %v846_v50 = vsel %vm366_vm9, %v841_v4, 0.0 }
 0x228   : > { %v852_v38 = vmul.f32 %v2000_v1, %v846_v50 }
 0x229   : > { %v856_v40 = vpop.permute.xlu1 %855  ;;  %1516 = vset.pattern.permute.xlu1 %v1590_v13 }
 0x22a   : > { %v854_v23 = vadd.f32 %v852_v38, %v835_v21  ;;  %v863_v32 = vsel %vm859_vm11, 0.0, %v856_v40  ;;  %1255 = vperm.xlu1 %1516, %v1973_v7  }
 0x22b   : > { %v864_v8 = vsel %vm359_vm14, %v863_v32, 0.0 }
 0x22c   : > { %v870_v42 = vmul.f32 %v2006_v2, %v864_v8 }
 0x22d   : > { %v858_v44 = vpop.permute.xlu1 %857 }
 0x22e   : > { %v872_v52 = vadd.f32 %v870_v42, %v853_v36  ;;  %v860_v49 = vsel %vm859_vm11, %v856_v40, %v858_v44  ;;  %1517 = vset.pattern.permute.xlu1 %v1591_v14  ;;  %v2123_v14 = vpop.permute.xlu0 %1058  ;;  %vm941_vm11 = vcmask 932864  }
 0x22f   : > { %v865_v1 = vsel %vm360_vm15, %v860_v49, 0.0  ;;  %1273 = vperm.xlu1 %1517, %v1973_v7  }
 0x230   : > { %v871_v13 = vmul.f32 %v2006_v2, %v865_v1 }
 0x231   : > { %v875_v56 = vpop.permute.xlu1 %874 }
 0x232   : > { %v873_v57 = vadd.f32 %v871_v13, %v854_v23  ;;  %v2125_v35 = vpop.permute.xlu0 %1075  ;;  %v881_v63 = vsel %vm2378_vm6, 0.0, %v875_v56 }
 0x233   : > { %v882_v24 = vsel %vm361_vm4, %v881_v63, 0.0 }
 0x234   : > { %v888_v10 = vmul.f32 %v1858_v48, %v882_v24 }
 0x235   : > { %v877_v25 = vpop.permute.xlu1 %876 }
 0x236   : > { %v878_v2 = vsel %vm2378_vm6, %v875_v56, %v877_v25  ;;  %v903_v41 = vpop.permute.xlu0 %902  ;;  %v890_v29 = vadd.f32 %v888_v10, %v872_v52 }
 0x237   : > { %v883_v0 = vsel %vm362_vm2, %v878_v2, 0.0  ;;  %v907_v17 = vsel %vm2386_vm10, %v903_v41, 0.0  ;;  %vm1012_vm10 = vcmask 900096  }
 0x238   : > { %v889_v47 = vmul.f32 %v1858_v48, %v883_v0  ;;  %v909_v48 = vsel %vm364_vm5, %v907_v17, 0.0  ;;  %v898_v8 = vadd.f32 %v896_v33, %v890_v29 }
 0x239   : > { %v901_v39 = vpop.permute.xlu1 %900  ;;  %v915_v32 = vmul.f32 %v1863_v51, %v909_v48 }
 0x23a   : > { %v904_v15 = vsel %vm2385_vm12, %v901_v39, %v903_v41  ;;  %v919_v19 = vpop.permute.xlu0 %918  ;;  %v891_v45 = vadd.f32 %v889_v47, %v873_v57  ;;  %vm2387_vm12 = vcmask 924672  }
 0x23b   : > { %v908_v20 = vsel %vm363_vm7, %v904_v15, 0.0 }
 0x23c   : > { %v899_v50 = vadd.f32 %v897_v31, %v891_v45  ;;  %v914_v38 = vmul.f32 %v1863_v51, %v908_v20 }
 0x23d   : > { %v921_v34 = vpop.permute.xlu1 %920 }
 0x23e   : > { %v923_v21 = vsel %vm922_vm13, %v919_v19, %v921_v34  ;;  %v926_v6 = vsel %vm922_vm13, %v921_v34, 0.0  ;;  %vm2388_vm13 = vmmov %vm2387_vm12  ;;  %v916_v56 = vadd.f32 %v914_v38, %v898_v8  ;;  %v917_v57 = vadd.f32 %v915_v32, %v899_v50  ;;  %v2161_v25 = vpop.permute.xlu0 %1094 }
 0x23f   : > { %v927_v40 = vsel %vm365_vm8, %v923_v21, 0.0  ;;  %v928_v23 = vsel %vm366_vm9, %v926_v6, 0.0 }
 0x240   : > { %v933_v1 = vmul.f32 %v2012_v12, %v927_v40  ;;  %v934_v13 = vmul.f32 %v2012_v12, %v928_v23 }
 0x241   : > { %v938_v16 = vpop.permute.xlu1 %937 }
 0x245   : > { %v940_v22 = vpop.permute.xlu1 %939 }
 0x246   : > { %v942_v36 = vsel %vm941_vm11, %v938_v16, %v940_v22  ;;  %v945_v4 = vsel %vm941_vm11, %v940_v22, 0.0  ;;  %vm2389_vm11 = vcmask 908288  }
 0x247   : > { %v946_v44 = vsel %vm359_vm14, %v942_v36, 0.0  ;;  %v947_v9 = vsel %vm360_vm15, %v945_v4, 0.0 }
 0x248   : > { %v952_v51 = vmul.f32 %v1867_v54, %v946_v44  ;;  %v953_v39 = vmul.f32 %v1867_v54, %v947_v9 }
 0x249   : > { %v957_v58 = vpop.permute.xlu1 %956 }
 0x24d   : > { %v959_v60 = vpop.permute.xlu1 %958 }
 0x24e   : > { %v960_v52 = vsel %vm2387_vm12, %v957_v58, %v959_v60  ;;  %v963_v49 = vsel %vm2388_vm13, %v959_v60, 0.0  ;;  %v935_v58 = vadd.f32 %v933_v1, %v916_v56  ;;  %v936_v60 = vadd.f32 %v934_v13, %v917_v57  ;;  %vm2390_vm12 = vmmov %vm2389_vm11 }
 0x24f   : > { %v964_v34 = vsel %vm361_vm4, %v960_v52, 0.0  ;;  %v965_v16 = vsel %vm362_vm2, %v963_v49, 0.0  ;;  %vm2391_vm13 = vcmask 916480  }
 0x250   : > { %v970_v63 = vmul.f32 %v1877_v59, %v964_v34  ;;  %v971_v0 = vmul.f32 %v1877_v59, %v965_v16  ;;  %vm2392_vm6 = vmmov %vm2391_vm13  ;;  %v954_v24 = vadd.f32 %v952_v51, %v935_v58  ;;  %v955_v47 = vadd.f32 %v953_v39, %v936_v60  ;;  %v1114_v59 = vpop.permute.xlu0 %1113 }
 0x251   : > { %v975_v43 = vpop.permute.xlu1 %974 }
 0x252   : > { %v972_v19 = vadd.f32 %v970_v63, %v954_v24  ;;  %v973_v45 = vadd.f32 %v971_v0, %v955_v47 }
 0x254   : > { %v1083_v50 = vpop.permute.xlu0 %1082 }
 0x255   : > { %v977_v37 = vpop.permute.xlu1 %976 }
 0x256   : > { %v978_v54 = vsel %vm2391_vm13, %v975_v43, %v977_v37  ;;  %v981_v41 = vsel %vm2392_vm6, %v977_v37, 0.0  ;;  %vm1050_vm6 = vcmask 793600  }
 0x257   : > { %v986_v43 = vmul.f32 %v2018_v5, %v978_v54  ;;  %v987_v37 = vmul.f32 %v2018_v5, %v981_v41 }
 0x259   : > { %v991_v61 = vpop.permute.xlu1 %990  ;;  %v988_v5 = vadd.f32 %v986_v43, %v972_v19  ;;  %v989_v36 = vadd.f32 %v987_v37, %v973_v45 }
 0x25d   : > { %v993_v62 = vpop.permute.xlu1 %992 }
 0x25e   : > { %v994_v12 = vsel %vm2389_vm11, %v991_v61, %v993_v62  ;;  %v997_v2 = vsel %vm2390_vm12, %v993_v62, 0.0  ;;  %vm2399_vm12 = vcmask 924672  }
 0x25f   : > { %v998_v15 = vsel %vm363_vm7, %v994_v12, 0.0  ;;  %v999_v61 = vsel %vm364_vm5, %v997_v2, 0.0  ;;  %vm2400_vm13 = vmmov %vm2399_vm12 }
 0x260   : > { %v1004_v21 = vmul.f32 %v2022_v30, %v998_v15  ;;  %v1005_v6 = vmul.f32 %v2022_v30, %v999_v61 }
 0x261   : > { %v2127_v7 = vpop.permute.xlu1 %1008 }
 0x262   : > { %v1006_v38 = vadd.f32 %v1004_v21, %v988_v5  ;;  %v1007_v40 = vadd.f32 %v1005_v6, %v989_v36 }
 0x265   : > { %v1011_v27 = vpop.permute.xlu1 %1010 }
 0x266   : > { %v1013_v62 = vsel %vm1012_vm10, %v2127_v7, %v1011_v27  ;;  %v1016_v17 = vsel %vm1012_vm10, %v1011_v27, 0.0  ;;  %vm1086_vm10 = vcmask 777216  }
 0x267   : > { %v1017_v31 = vsel %vm365_vm8, %v1013_v62, 0.0  ;;  %v1018_v7 = vsel %vm366_vm9, %v1016_v17, 0.0  ;;  %v1124_v17 = vpop.permute.xlu0 %1123 }
 0x268   : > { %v1023_v30 = vmul.f32 %v2028_v11, %v1017_v31  ;;  %v1024_v4 = vmul.f32 %v2028_v11, %v1018_v7 }
 0x269   : > { %v1028_v46 = vpop.permute.xlu1 %1027 }
 0x26a   : > { %v1025_v1 = vadd.f32 %v1023_v30, %v1006_v38  ;;  %v1026_v13 = vadd.f32 %v1024_v4, %v1007_v40 }
 0x26d   : > { %v1030_v28 = vpop.permute.xlu1 %1029 }
 0x26e   : > { %v1032_v29 = vsel %vm1031_vm3, %v1028_v46, %v1030_v28  ;;  %v1035_v20 = vsel %vm1031_vm3, %v1030_v28, 0.0  ;;  %vm1069_vm3 = vcmask 785408  }
 0x26f   : > { %v1036_v46 = vsel %vm359_vm14, %v1032_v29, 0.0  ;;  %v1037_v28 = vsel %vm360_vm15, %v1035_v20, 0.0  ;;  %vm1105_vm14 = vcmask 769024   ;;  %v1178_v29 = vpop.permute.xlu0 %1177 }
 0x270   : > { %v1043_v44 = vmul.f32 %v2032_v18, %v1037_v28 }
 0x271   : > { %v1047_v42 = vpop.permute.xlu1 %1046 }
 0x272   : > { %v1045_v16 = vadd.f32 %v1043_v44, %v1026_v13 }
 0x273   : > { %v1222_v21 = vpop.permute.xlu0 %1221 }
 0x275   : > { %v1049_v22 = vpop.permute.xlu1 %1048 }
 0x276   : > { %v1051_v48 = vsel %vm1050_vm6, %v1047_v42, %v1049_v22  ;;  %v1054_v33 = vsel %vm1050_vm6, %v1049_v22, 0.0  ;;  %v1042_v42 = vmul.f32 %v2032_v18, %v1036_v46  ;;  %vm2401_vm6 = vcmask 916480  }
 0x277   : > { %v1055_v23 = vsel %vm361_vm4, %v1051_v48, 0.0  ;;  %v1056_v32 = vsel %vm362_vm2, %v1054_v33, 0.0  ;;  %v1240_v7 = vpop.permute.xlu0 %1239 }
 0x278   : > { %v1061_v56 = vmul.f32 %v2123_v14, %v1055_v23  ;;  %v1062_v57 = vmul.f32 %v2123_v14, %v1056_v32  ;;  %v1044_v18 = vadd.f32 %v1042_v42, %v1025_v1 }
 0x279   : > { %v1066_v10 = vpop.permute.xlu1 %1065 }
 0x27a   : > { %v1063_v60 = vadd.f32 %v1061_v56, %v1044_v18  ;;  %v1064_v12 = vadd.f32 %v1062_v57, %v1045_v16 }
 0x27d   : > { %v1068_v27 = vpop.permute.xlu1 %1067 }
 0x27e   : > { %v1070_v11 = vsel %vm1069_vm3, %v1066_v10, %v1068_v27  ;;  %v1073_v49 = vsel %vm1069_vm3, %v1068_v27, 0.0  ;;  %v1144_v27 = vpop.permute.xlu0 %1143 }
 0x27f   : > { %v1078_v22 = vmul.f32 %v2125_v35, %v1070_v11  ;;  %v1079_v58 = vmul.f32 %v2125_v35, %v1073_v49 }
 0x281   : > { %v1085_v8 = vpop.permute.xlu1 %1084  ;;  %v1080_v0 = vadd.f32 %v1078_v22, %v1063_v60  ;;  %v1081_v54 = vadd.f32 %v1079_v58, %v1064_v12 }
 0x282   : > { %v1087_v9 = vsel %vm1086_vm10, %v1083_v50, %v1085_v8  ;;  %v1090_v52 = vsel %vm1086_vm10, %v1085_v8, 0.0  ;;  %vm2402_vm10 = vmmov %vm2401_vm6 }
 0x283   : > { %v1091_v51 = vsel %vm363_vm7, %v1087_v9, 0.0  ;;  %v1092_v39 = vsel %vm364_vm5, %v1090_v52, 0.0 }
 0x284   : > { %v1097_v2 = vmul.f32 %v2161_v25, %v1091_v51  ;;  %v1098_v14 = vmul.f32 %v2161_v25, %v1092_v39 }
 0x285   : > { %v1102_v34 = vpop.permute.xlu1 %1101 }
 0x286   : > { %v1099_v61 = vadd.f32 %v1097_v2, %v1080_v0  ;;  %v1100_v62 = vadd.f32 %v1098_v14, %v1081_v54 }
 0x289   : > { %v1104_v63 = vpop.permute.xlu1 %1103 }
 0x28a   : > { %v1106_v41 = vsel %vm1105_vm14, %v1102_v34, %v1104_v63  ;;  %v1109_v24 = vsel %vm1105_vm14, %v1104_v63, 0.0 }
 0x28b   : > { %v1110_v47 = vsel %vm365_vm8, %v1106_v41, 0.0  ;;  %v1111_v10 = vsel %vm366_vm9, %v1109_v24, 0.0  ;;  %vm2393_vm8 = vcmask 130048  }
 0x28c   : > { %v1116_v15 = vmul.f32 %v1114_v59, %v1110_v47  ;;  %v1117_v35 = vmul.f32 %v1114_v59, %v1111_v10  ;;  %v1280_v59 = vld [vmem:[%s2366_s8] sm:$0xf]  ;;  %vm2394_vm9 = vmmov %vm2393_vm8 }
 0x28e   : > { %v1118_v43 = vadd.f32 %v1116_v15, %v1099_v61  ;;  %v1119_v37 = vadd.f32 %v1117_v35, %v1100_v62 }
 0x290   : > { %v2218_v19 = vadd.f32 %v1124_v17, %v1118_v43  ;;  %v2220_v25 = vadd.f32 %v1124_v17, %v1119_v37 }
 0x292   : > { %1133 = vrot.lane.b32.xlu0 %v2220_v25, %s1593_s24  ;;  %1131 = vrot.lane.b32.xlu1 %v2218_v19, %s1593_s24  ;;  %s1522_s24 = sshll.u32 %s1631_s14, 4  ;;  %s1523_s24 = int_to_ptr.vmem [resolvable:$false] %s1522_s24 }
 0x296   : > { %1152 = vrot.lane.b32.xlu0 %v2220_v25, %s1594_s25  ;;  %1150 = vrot.lane.b32.xlu1 %v2218_v19, %s1594_s25  ;;  %s1524_s25 = scalar_lea.vmem %s1523_s24, 512 }
 0x29a   : > { %1166 = vrot.lane.b32.xlu0 %v2218_v19, %s1597_s28  ;;  %1168 = vrot.lane.b32.xlu1 %v2220_v25, %s1597_s28  ;;  %v1160_v45 = vpop.permute.xlu1 %1159 }
 0x29e   : > { %1212 = vrot.lane.b32.xlu0 %v2220_v25, %s1595_s26  ;;  %1184 = vrot.lane.b32.xlu1 %v2218_v19, %s1599_s29 }
 0x29f   : > { %v1196_v20 = vpop.permute.xlu1 %1195 }
 0x2a2   : > { %1228 = vrot.lane.b32.xlu0 %v2218_v19, %s2382_s23  ;;  %1186 = vrot.lane.b32.xlu1 %v2220_v25, %s1599_s29  ;;  %s1388_s29 = sshll.u32 %s1703_s13, 8 }
 0x2a3   : > { %s2314_s22 = scalar_lea.hbm %s2367_s9, %s1388_s29 }
 0x2a4   : > { %v1204_v6 = vpop.permute.xlu1 %1203 }
 0x2a5   : > { %v1207_v62 = vmul.f32 %v1204_v6, %v2220_v25 }
 0x2a6   : > { %1246 = vrot.lane.b32.xlu0 %v2218_v19, %s2383_s17  ;;  %1210 = vrot.lane.b32.xlu1 %v2218_v19, %s1595_s26  ;;  %s323_s26 = sand.u32 1, %s1572_s10  }
 0x2a7   : > { %s1379_s28 = sshll.u32 %s323_s26, 4  ;;  %s1302_s13 = scalar_lea.sflag [#allocation3], %s323_s26 }
 0x2a8   : > { %s325_s16 = scalar_lea.vmem [#allocation2], %s1379_s28 }
 0x2a9   : > { %v2257_v31 = vpop.permute.xlu1 %1255 }
 0x2aa   : > { %1283 = vperm.xlu0 %1515, %v1280_v59   ;;  %1230 = vrot.lane.b32.xlu1 %v2220_v25, %s2382_s23  ;;  %s1316_s23 = sshll.u32 %s325_s16, 4  ;;  %s2316_s23 = int_to_ptr.vmem [resolvable:$true] %s1316_s23 }
 0x2ab   : > { %s1518_s27 = scalar_lea.vmem %s2316_s23, 256  ;;  %p1525_p0 = scmp.lt.s32.totalorder %s2316_s23, %s1523_s24 }
 0x2ac   : > { %p1519_p11 = scmp.ne.s32.totalorder %s2316_s23, %s1518_s27  ;;  %p1526_p1 = scmp.lt.s32.totalorder %s1524_s25, %s1518_s27 }
 0x2ae   : > { %1248 = vrot.lane.b32.xlu1 %v2220_v25, %s2383_s17  ;;  %v2259_v48 = vpop.permute.xlu1 %1273  ;;  %p1520_p12 = pnand %p1519_p11, %p1720_p5  ;;  %p1527_p2 = por %p1526_p1, %p1525_p0 }
 0x2b0   : > { %p1521_p13 = pneg %p1520_p12 }
 0x2b2   : > { %1262 = vrot.lane.b32.xlu1 %v2218_v19, %s2384_s21  ;;  %p1528_p3 = pnand %p1527_p2, %p1521_p13 }
 0x2b6   : > { %1264 = vrot.lane.b32.xlu1 %v2220_v25, %s2384_s21 }
 0x304   : > { %v1134_v33 = vpop.permute.xlu0 %1133  ;;  %v1132_v5 = vpop.permute.xlu1 %1131 }
 0x305   : > { %v1135_v50 = vsel %vm489_vm0, %v1132_v5, %v1134_v33  ;;  %v1138_v38 = vsel %vm489_vm0, 0.0, %v1132_v5  ;;  %vm2395_vm0 = vcmask 7168  }
 0x306   : > { %v1139_v42 = vsel %vm361_vm4, %v1138_v38, 0.0  ;;  %v1140_v44 = vsel %vm362_vm2, %v1135_v50, 0.0  ;;  %vm2396_vm15 = vmmov %vm2395_vm0 }
 0x307   : > { %v1147_v39 = vmul.f32 %v1144_v27, %v1140_v44  ;;  %v1146_v18 = vmul.f32 %v1144_v27, %v1139_v42 }
 0x308   : > { %v1153_v36 = vpop.permute.xlu0 %1152  ;;  %v1151_v46 = vpop.permute.xlu1 %1150 }
 0x309   : > { %v1154_v23 = vsel %vm2393_vm8, %v1151_v46, %v1153_v36  ;;  %v1157_v8 = vsel %vm2394_vm9, 0.0, %v1151_v46 }
 0x30a   : > { %v1163_v11 = vmul.f32 %v1160_v45, %v1154_v23  ;;  %v1162_v56 = vmul.f32 %v1160_v45, %v1157_v8 }
 0x30c   : > { %v1169_v28 = vpop.permute.xlu1 %1168  ;;  %v1167_v30 = vpop.permute.xlu0 %1166  ;;  %v1165_v60 = vadd.f32 %v1163_v11, %v1147_v39  ;;  %v1164_v2 = vadd.f32 %v1162_v56, %v1146_v18 }
 0x30d   : > { %v1170_v40 = vsel %vm530_vm1, %v1167_v30, %v1169_v28  ;;  %v1173_v32 = vsel %vm530_vm1, 0.0, %v1167_v30  ;;  %vm2397_vm1 = vcmask 1039360  }
 0x30e   : > { %v1175_v9 = vsel %vm364_vm5, %v1170_v40, 0.0  ;;  %v1174_v49 = vsel %vm363_vm7, %v1173_v32, 0.0  ;;  %vm2398_vm11 = vmmov %vm2397_vm1 }
 0x30f   : > { %v1181_v34 = vmul.f32 %v1178_v29, %v1175_v9  ;;  %v1180_v16 = vmul.f32 %v1178_v29, %v1174_v49  ;;  %v1206_v29 = vmul.f32 %v1204_v6, %v2218_v19 }
 0x310   : > { %v1185_v4 = vpop.permute.xlu1 %1184  ;;  %v1213_v57 = vpop.permute.xlu0 %1212 }
 0x311   : > { %v1191_v1 = vsel %vm2395_vm0, 0.0, %v1185_v4  ;;  %v1183_v14 = vadd.f32 %v1181_v34, %v1165_v60  ;;  %v1182_v54 = vadd.f32 %v1180_v16, %v1164_v2  ;;  %v1217_v47 = vsel %vm2398_vm11, %v1213_v57, 0.0 }
 0x312   : > { %v1192_v22 = vsel %vm361_vm4, %v1191_v1, 0.0  ;;  %v1219_v43 = vsel %vm364_vm5, %v1217_v47, 0.0 }
 0x313   : > { %v1198_v63 = vmul.f32 %v1196_v20, %v1192_v22  ;;  %v1225_v33 = vmul.f32 %v1222_v21, %v1219_v43 }
 0x314   : > { %v1187_v52 = vpop.permute.xlu1 %1186  ;;  %v1229_v41 = vpop.permute.xlu0 %1228 }
 0x315   : > { %v1188_v13 = vsel %vm2396_vm15, %v1185_v4, %v1187_v52  ;;  %v1200_v17 = vadd.f32 %v1198_v63, %v1182_v54 }
 0x316   : > { %v1193_v51 = vsel %vm362_vm2, %v1188_v13, 0.0 }
 0x317   : > { %v1199_v12 = vmul.f32 %v1196_v20, %v1193_v51  ;;  %v1208_v36 = vadd.f32 %v1206_v29, %v1200_v17 }
 0x318   : > { %v1211_v58 = vpop.permute.xlu1 %1210  ;;  %v1247_v5 = vpop.permute.xlu0 %1246 }
 0x319   : > { %v1214_v0 = vsel %vm2397_vm1, %v1211_v58, %v1213_v57  ;;  %v1201_v10 = vadd.f32 %v1199_v12, %v1183_v14 }
 0x31a   : > { %v1218_v61 = vsel %vm363_vm7, %v1214_v0, 0.0 }
 0x31b   : > { %v1209_v20 = vadd.f32 %v1207_v62, %v1201_v10  ;;  %v1224_v27 = vmul.f32 %v1222_v21, %v1218_v61 }
 0x31c   : > { %v1231_v24 = vpop.permute.xlu1 %1230 }
 0x31d   : > { %v1232_v15 = vsel %vm2399_vm12, %v1229_v41, %v1231_v24  ;;  %v1235_v35 = vsel %vm2400_vm13, %v1231_v24, 0.0  ;;  %v1226_v38 = vadd.f32 %v1224_v27, %v1208_v36  ;;  %v1227_v40 = vadd.f32 %v1225_v33, %v1209_v20 }
 0x31e   : > { %v1236_v37 = vsel %vm361_vm4, %v1232_v15, 0.0  ;;  %v1237_v59 = vsel %vm362_vm2, %v1235_v35, 0.0  ;;  %vm2403_vm2 = vcmask 908288  }
 0x31f   : > { %v1242_v46 = vmul.f32 %v1240_v7, %v1236_v37  ;;  %v1243_v28 = vmul.f32 %v1240_v7, %v1237_v59  ;;  %vm2404_vm4 = vmmov %vm2403_vm2 }
 0x320   : > { %v1249_v45 = vpop.permute.xlu1 %1248 }
 0x321   : > { %v1250_v30 = vsel %vm2401_vm6, %v1247_v5, %v1249_v45  ;;  %v1253_v4 = vsel %vm2402_vm10, %v1249_v45, 0.0  ;;  %v1244_v23 = vadd.f32 %v1242_v46, %v1226_v38  ;;  %v1245_v32 = vadd.f32 %v1243_v28, %v1227_v40 }
 0x322   : > { %v1258_v8 = vmul.f32 %v2257_v31, %v1250_v30  ;;  %v1259_v6 = vmul.f32 %v2257_v31, %v1253_v4 }
 0x324   : > { %v1263_v50 = vpop.permute.xlu1 %1262  ;;  %v1260_v49 = vadd.f32 %v1258_v8, %v1244_v23  ;;  %v1261_v1 = vadd.f32 %v1259_v6, %v1245_v32 }
 0x328   : > { %v1265_v42 = vpop.permute.xlu1 %1264 }
 0x329   : > { %v1266_v21 = vsel %vm2403_vm2, %v1263_v50, %v1265_v42  ;;  %v1269_v7 = vsel %vm2404_vm4, %v1265_v42, 0.0  ;;  %v1284_v56 = vpop.permute.xlu0 %1283 }
 0x32a   : > { %v1270_v44 = vsel %vm363_vm7, %v1266_v21, 0.0  ;;  %v1271_v9 = vsel %vm364_vm5, %v1269_v7, 0.0  ;;  %vm1296_vm5 = vcmask 1043456  }
 0x32b   : > { %v1276_v52 = vmul.f32 %v2259_v48, %v1270_v44  ;;  %v1277_v11 = vmul.f32 %v2259_v48, %v1271_v9 }
 0x32d   : > { %v1278_v31 = vadd.f32 %v1276_v52, %v1260_v49  ;;  %v1279_v13 = vadd.f32 %v1277_v11, %v1261_v1 }
 0x32f   : > { %v1286_v57 = vadd.f32 %v1284_v56, %v1278_v31  ;;  %v1287_v51 = vadd.f32 %v1284_v56, %v1279_v13 }
 0x331   : > { %v1288_v39 = vmax.f32 %v2218_v19, %v1286_v57  ;;  %v1289_v55 = vmax.f32 %v2220_v25, %v1287_v51 }
 0x333   : > { %v1292_v53 = vrot.slane %v1288_v39, 4  ;;  %v1293_v34 = vrot.slane %v1289_v55, 4 }
 0x335   : > { %v1297_v19 = vsel %vm1296_vm5, %v1936_v26, %v1292_v53  ;;  %v1298_v25 = vsel %vm1296_vm5, %v1939_v3, %v1293_v34 }
 0x336   : > { %1299 = vst [vmem:[%s325_s16] sm:$0xff] %v1297_v19  ;;  %1300 = vst [vmem:[%s325_s16 + $0x8] sm:$0xff] %v1298_v25 }
 0x337   : > { %1531 = shalt.err (!%p1528_p3)
}
 0x338   : > { %s1532_s26 = scalar_lea.hbm %s2314_s22, 256  ;;  %s1536_s16 = scalar_lea.hbm %s2367_s9, 512 }
 0x339   : > { %p1533_p4 = scmp.ne.s32.totalorder %s2314_s22, %s1532_s26  ;;  %p1537_p9 = scmp.lt.u32.totalorder %s2314_s22, %s2367_s9 }
 0x33a   : > { %p1538_p10 = scmp.lt.u32.totalorder %s1536_s16, %s1532_s26  ;;  %p1540_p12 = scmp.lt.u32.totalorder %s1532_s26, %s2314_s22 }
 0x33b   : > { %p1534_p7 = pnand %p1533_p4, %p1720_p5 }
 0x33c   : > { %p1539_p11 = por %p1538_p10, %p1537_p9 }
 0x33d   : > { %p1535_p8 = pneg %p1534_p7 }
 0x33e   : > { %p1541_p13 = por %p1540_p12, %p1539_p11 }
 0x340   : > { %p1542_p0 = pnand %p1541_p13, %p1535_p8 }
 0x342   : > { %1545 = shalt.err (!%p1542_p0)
}
 0x343   : > { %1389 = dma.vmem_to_hbm [thread:$0]  (%p1720_p5), %s2316_s23, 256, %s2314_s22, %s1302_s13  }
 0x344 PF: > { %p1395_p1 = scmp.ge.s32.totalorder %s1580_s12, 2  ;;  %s1328_s27 = sand.u32 1, %s1568_s30  }
 0x345   : > { %s1329_s14 = scalar_lea.sflag [#allocation3], %s1328_s27 }
 0x346   : > { %p1392_p2 = pnand %p1395_p1, %p1724_p6 }
 0x348   : > { %1563 = dma.done.wait (!%p1392_p2), %s1329_s14, 256  }
 0x349   : > { %1565 = vsyncadd (!%p1392_p2), %s1329_s14, 4294967040  ;;  %p19_p3 = scmp.ge.s32.totalorder %s1707_s15, 4   ;;  %s2405_s30 = smov %s1572_s10 }
 0x34a   : > { %s2406_s10 = smov %s1576_s11  ;;  %s2407_s11 = smov %s1718_s18 }
 0x34b   : > { %s2408_s12 = smov %s1707_s15  ;;  %21 = sbr.rel (!%p19_p3) target bundleno = 3 (0x3), region = 91 }
 0x352   :  { %1334 = vsyncpa [#allocation3], 1 }
 0x353   :  { %1336 = vsyncpa [#allocation3 + $0x1], 1 }

</bundles_post_ra>
